<compile_context>
chip_gen: v5e
topology: v5e:2x2
jax: 0.10.0
libtpu: 0.0.40
codegen_flags: <defaults>
</compile_context>

<pallas_src>
import functools

import jax
import jax.numpy as jnp
from jax.experimental import pallas as pl
from jax.experimental.pallas import tpu as pltpu

_VMEM_LIMIT = 48 * 1024 * 1024       # explicit scoped-VMEM limit for every kernel
_FULLK_BUDGET = 24 * 1024 * 1024     # double-buffered working-set budget for full-K


# ----------------------------------------------------------------------------
# helpers
# ----------------------------------------------------------------------------
def _pick_tile(dim, candidates):
    """Largest candidate tile that evenly divides `dim`; else the full dim.

    TODO(synk): for non-tile-multiple dims this falls back to one giant block;
    padding M/N/K to tile multiples would be safer for very large odd shapes.
    """
    for c in candidates:
        if dim >= c and dim % c == 0:
            return c
    return dim


def _erf(x):
    # Abramowitz & Stegun 7.1.26 rational approximation (|err| < 1.5e-7).
    # Division goes through pl.reciprocal(approx=True) -> EUP slot (VALU stays free).
    a1, a2, a3, a4, a5 = (0.254829592, -0.284496736, 1.421413741,
                          -1.453152027, 1.061405429)
    p = 0.3275911
    sign = jnp.where(x >= 0.0, 1.0, -1.0)
    ax = jnp.abs(x)
    t = pl.reciprocal(1.0 + p * ax, approx=True)
    poly = ((((a5 * t + a4) * t + a3) * t + a2) * t + a1) * t
    return sign * (1.0 - poly * jnp.exp(-ax * ax))


def _apply_act(y, activation):
    if activation == "gelu":
        return 0.5 * y * (1.0 + _erf(y * jnp.float32(0.7071067811865476)))
    return y


# ----------------------------------------------------------------------------
# dense: out = act(x @ w + b)
#   full-K single-pass path (preferred), k-loop + f32 accumulator fallback
# ----------------------------------------------------------------------------
def _dense_fullk_kernel(x_ref, w_ref, b_ref, o_ref, *, activation):
    y = jnp.dot(x_ref[...], w_ref[...], preferred_element_type=jnp.float32)
    y = y + b_ref[...]
    o_ref[...] = _apply_act(y, activation).astype(o_ref.dtype)


def _dense_kloop_kernel(x_ref, w_ref, b_ref, o_ref, acc_ref, *, activation):
    k = pl.program_id(2)

    @pl.when(k == 0)
    def _():
        acc_ref[...] = jnp.zeros_like(acc_ref)

    acc_ref[...] += jnp.dot(x_ref[...], w_ref[...],
                            preferred_element_type=jnp.float32)

    @pl.when(k == pl.num_programs(2) - 1)
    def _():
        y = acc_ref[...] + b_ref[...]
        o_ref[...] = _apply_act(y, activation).astype(o_ref.dtype)


def dense(x, w, b, activation=None, out_dtype=jnp.bfloat16):
    M, K = x.shape
    N = w.shape[1]
    tm = _pick_tile(M, (512, 256, 128))
    tn = _pick_tile(N, (512, 256, 128))

    x = x.astype(jnp.bfloat16)              # no-op in steady state (h is bf16)
    b2 = b.reshape(1, N).astype(jnp.float32)

    # Estimated double-buffered working set of the full-K plan.
    fullk_bytes = 2 * (tm * K * 2 + K * tn * 2 + tm * tn * 2 + tn * 4)
    if fullk_bytes <= _FULLK_BUDGET:
        kernel = functools.partial(_dense_fullk_kernel, activation=activation)
        return pl.pallas_call(
            kernel,
            grid=(M // tm, N // tn),
            in_specs=[
                pl.BlockSpec((tm, K), lambda i, j: (i, 0)),
                pl.BlockSpec((K, tn), lambda i, j: (0, j)),
                pl.BlockSpec((1, tn), lambda i, j: (0, j)),
            ],
            out_specs=pl.BlockSpec((tm, tn), lambda i, j: (i, j)),
            out_shape=jax.ShapeDtypeStruct((M, N), out_dtype),
            compiler_params=pltpu.CompilerParams(
                dimension_semantics=("parallel", "parallel"),
                vmem_limit_bytes=_VMEM_LIMIT),
        )(x, w, b2)

    # k-loop fallback for very large K.
    tk = _pick_tile(K, (1024, 512, 256, 128))
    kernel = functools.partial(_dense_kloop_kernel, activation=activation)
    return pl.pallas_call(
        kernel,
        grid=(M // tm, N // tn, K // tk),
        in_specs=[
            pl.BlockSpec((tm, tk), lambda i, j, k: (i, k)),
            pl.BlockSpec((tk, tn), lambda i, j, k: (k, j)),
            pl.BlockSpec((1, tn), lambda i, j, k: (0, j)),
        ],
        out_specs=pl.BlockSpec((tm, tn), lambda i, j, k: (i, j)),
        out_shape=jax.ShapeDtypeStruct((M, N), out_dtype),
        scratch_shapes=[pltpu.VMEM((tm, tn), jnp.float32)],
        compiler_params=pltpu.CompilerParams(
            dimension_semantics=("parallel", "parallel", "arbitrary"),
            vmem_limit_bytes=_VMEM_LIMIT),
    )(x, w, b2)


# ----------------------------------------------------------------------------
# layernorm (standalone; only used for the embedding LN and as a fallback)
# ----------------------------------------------------------------------------
def _ln_stats(y, g_ref, b_ref, o_ref, eps):
    mean = jnp.mean(y, axis=-1, keepdims=True)
    yc = y - mean
    var = jnp.mean(yc * yc, axis=-1, keepdims=True)
    inv = jax.lax.rsqrt(var + eps)
    o_ref[...] = (yc * inv * g_ref[...] + b_ref[...]).astype(o_ref.dtype)


def _ln_kernel(x_ref, g_ref, b_ref, o_ref, *, eps):
    _ln_stats(x_ref[...].astype(jnp.float32), g_ref, b_ref, o_ref, eps)


def _ln_res_kernel(x_ref, r_ref, g_ref, b_ref, o_ref, *, eps):
    y = x_ref[...].astype(jnp.float32) + r_ref[...].astype(jnp.float32)
    _ln_stats(y, g_ref, b_ref, o_ref, eps)


def layernorm(x, gamma, beta, residual=None, eps=1e-12, out_dtype=jnp.bfloat16):
    M, H = x.shape
    tm = _pick_tile(M, (512, 256, 128))

    arrays = [x]
    in_specs = [pl.BlockSpec((tm, H), lambda i: (i, 0))]
    if residual is not None:
        arrays.append(residual)
        in_specs.append(pl.BlockSpec((tm, H), lambda i: (i, 0)))
        kernel = functools.partial(_ln_res_kernel, eps=eps)
    else:
        kernel = functools.partial(_ln_kernel, eps=eps)
    arrays += [gamma.reshape(1, H).astype(jnp.float32),
               beta.reshape(1, H).astype(jnp.float32)]
    in_specs += [pl.BlockSpec((1, H), lambda i: (0, 0)),
                 pl.BlockSpec((1, H), lambda i: (0, 0))]

    return pl.pallas_call(
        kernel,
        grid=(M // tm,),
        in_specs=in_specs,
        out_specs=pl.BlockSpec((tm, H), lambda i: (i, 0)),
        out_shape=jax.ShapeDtypeStruct((M, H), out_dtype),
        compiler_params=pltpu.CompilerParams(
            dimension_semantics=("parallel",), vmem_limit_bytes=_VMEM_LIMIT),
    )(*arrays)


# ----------------------------------------------------------------------------
# fused dense + bias + residual + LayerNorm (wo and w2 epilogues)
#   requires tn == N == H so per-row LN stats are computed in one block
# ----------------------------------------------------------------------------
def _dense_ln_kernel(x_ref, w_ref, b_ref, r_ref, g_ref, bb_ref, o_ref, *, eps):
    y = jnp.dot(x_ref[...], w_ref[...], preferred_element_type=jnp.float32)
    y = y + b_ref[...] + r_ref[...].astype(jnp.float32)
    _ln_stats(y, g_ref, bb_ref, o_ref, eps)


def dense_ln(x, w, b, residual, gamma, beta, eps=1e-12, out_dtype=jnp.bfloat16):
    M, K = x.shape
    H = w.shape[1]
    tm = _pick_tile(M, (256, 128))

    fullk_bytes = 2 * (tm * K * 2 + K * H * 2 + 2 * tm * H * 2 + 3 * H * 4)
    if fullk_bytes > _FULLK_BUDGET:
        # TODO(synk): k-looped fused variant; for now fall back to two kernels.
        y = dense(x, w, b)
        return layernorm(y, gamma, beta, residual=residual, eps=eps,
                         out_dtype=out_dtype)

    kernel = functools.partial(_dense_ln_kernel, eps=eps)
    return pl.pallas_call(
        kernel,
        grid=(M // tm,),
        in_specs=[
            pl.BlockSpec((tm, K), lambda i: (i, 0)),
            pl.BlockSpec((K, H), lambda i: (0, 0)),
            pl.BlockSpec((1, H), lambda i: (0, 0)),
            pl.BlockSpec((tm, H), lambda i: (i, 0)),
            pl.BlockSpec((1, H), lambda i: (0, 0)),
            pl.BlockSpec((1, H), lambda i: (0, 0)),
        ],
        out_specs=pl.BlockSpec((tm, H), lambda i: (i, 0)),
        out_shape=jax.ShapeDtypeStruct((M, H), out_dtype),
        compiler_params=pltpu.CompilerParams(
            dimension_semantics=("parallel",), vmem_limit_bytes=_VMEM_LIMIT),
    )(x.astype(jnp.bfloat16), w, b.reshape(1, H).astype(jnp.float32),
      residual.astype(jnp.bfloat16),
      gamma.reshape(1, H).astype(jnp.float32),
      beta.reshape(1, H).astype(jnp.float32))


# ----------------------------------------------------------------------------
# flash attention over (B, S, H) slabs: all heads per grid step, online softmax
# over kv blocks; fully-masked kv blocks skipped via scalar-prefetched flags.
# ----------------------------------------------------------------------------
def _flash_attn_kernel(flags_ref, q_ref, k_ref, v_ref, mask_ref, o_ref,
                       m_sc, l_sc, acc_sc, *, scale, num_heads, head_dim):
    b = pl.program_id(0)
    kv = pl.program_id(2)

    @pl.when(kv == 0)
    def _():
        m_sc[...] = jnp.full_like(m_sc, -1e30)
        l_sc[...] = jnp.zeros_like(l_sc)
        acc_sc[...] = jnp.zeros_like(acc_sc)

    @pl.when(flags_ref[b, kv] != 0)          # skip fully-padded kv blocks
    def _():
        q_all = q_ref[0]                      # (tq, H) bf16
        k_all = k_ref[0]                      # (tkv, H) bf16
        v_all = v_ref[0]                      # (tkv, H) bf16
        madd = mask_ref[0]                    # (1, tkv) f32 additive mask
        tq = q_all.shape[0]

        alpha_cols = []
        pv_cols = []
        for h in range(num_heads):
            sl = slice(h * head_dim, (h + 1) * head_dim)
            qh, kh, vh = q_all[:, sl], k_all[:, sl], v_all[:, sl]
            # bf16 x bf16 QK^T on the MXU, f32 accumulation; scale/mask on f32 scores.
            # TODO(synk): K is contracted on dim 1 of both operands; emitting K^T from
            # the K projection would make this a plain NN matmul.
            s = jax.lax.dot_general(qh, kh, (((1,), (1,)), ((), ())),
                                    preferred_element_type=jnp.float32)
            s = s * scale + madd

            m_prev = m_sc[h]                                        # (tq, 1)
            m_new = jnp.maximum(m_prev, jnp.max(s, axis=-1, keepdims=True))
            alpha = jnp.exp(m_prev - m_new)
            p = jnp.exp(s - m_new)
            l_sc[h] = alpha * l_sc[h] + jnp.sum(p, axis=-1, keepdims=True)
            m_sc[h] = m_new

            alpha_cols.append(jnp.broadcast_to(alpha, (tq, head_dim)))
            pv_cols.append(jnp.dot(p.astype(vh.dtype), vh,
                                   preferred_element_type=jnp.float32))

        # One lane-dense (tq, H) accumulator read-modify-write per kv block.
        acc_sc[...] = (jnp.concatenate(alpha_cols, axis=-1) * acc_sc[...]
                       + jnp.concatenate(pv_cols, axis=-1))

    @pl.when(kv == pl.num_programs(2) - 1)
    def _():
        tq = acc_sc.shape[0]
        inv_cols = jnp.concatenate(
            [jnp.broadcast_to(pl.reciprocal(l_sc[h], approx=True), (tq, head_dim))
             for h in range(num_heads)], axis=-1)
        o_ref[0] = (acc_sc[...] * inv_cols).astype(o_ref.dtype)   # lane-dense store


def flash_attention(q, k, v, attention_mask, scale, *, num_heads):
    B, S, H = q.shape
    dh = H // num_heads
    tq = _pick_tile(S, (256, 128))
    tkv = _pick_tile(S, (256, 128))
    nq, nkv = S // tq, S // tkv

    # Extended additive mask per batch: (B, 1, S)
    ext = ((1.0 - attention_mask.astype(jnp.float32)) * -10000.0).reshape(B, 1, S)
    # Per-(batch, kv-block) "block has any valid token" flag (scalar prefetch).
    kv_flags = (jnp.max(attention_mask.astype(jnp.int32).reshape(B, nkv, tkv),
                        axis=-1) > 0).astype(jnp.int32)

    kernel = functools.partial(_flash_attn_kernel, scale=scale,
                               num_heads=num_heads, head_dim=dh)
    return pl.pallas_call(
        kernel,
        grid_spec=pltpu.PrefetchScalarGridSpec(
            num_scalar_prefetch=1,
            grid=(B, nq, nkv),
            in_specs=[
                pl.BlockSpec((1, tq, H), lambda b, qi, ki, flags: (b, qi, 0)),
                pl.BlockSpec((1, tkv, H), lambda b, qi, ki, flags: (b, ki, 0)),
                pl.BlockSpec((1, tkv, H), lambda b, qi, ki, flags: (b, ki, 0)),
                pl.BlockSpec((1, 1, tkv), lambda b, qi, ki, flags: (b, 0, ki)),
            ],
            out_specs=pl.BlockSpec((1, tq, H), lambda b, qi, ki, flags: (b, qi, 0)),
            scratch_shapes=[
                pltpu.VMEM((num_heads, tq, 1), jnp.float32),   # running max / head
                pltpu.VMEM((num_heads, tq, 1), jnp.float32),   # running sum / head
                pltpu.VMEM((tq, H), jnp.float32),              # lane-dense accumulator
            ]),
        out_shape=jax.ShapeDtypeStruct((B, S, H), jnp.bfloat16),
        compiler_params=pltpu.CompilerParams(
            dimension_semantics=("parallel", "parallel", "arbitrary"),
            vmem_limit_bytes=_VMEM_LIMIT),
    )(kv_flags, q.astype(jnp.bfloat16), k.astype(jnp.bfloat16),
      v.astype(jnp.bfloat16), ext)


# ----------------------------------------------------------------------------
# Parameters (deterministic, synthetic — no checkpoint loading)
# Weights are stored in bf16 once; biases / LN params in f32.
# ----------------------------------------------------------------------------
def init_params(key, *, vocab_size, max_pos, type_vocab, hidden, inter, layers,
                num_classes):
    keys = iter(jax.random.split(key, 64))

    def nrm(shape, dtype=jnp.bfloat16):
        return (0.02 * jax.random.normal(next(keys), shape)).astype(dtype)

    p = {
        "word_emb": nrm((vocab_size, hidden), jnp.float32),
        "pos_emb": nrm((max_pos, hidden), jnp.float32),
        "type_emb": nrm((type_vocab, hidden), jnp.float32),
        "emb_ln_g": jnp.ones((hidden,), jnp.float32),
        "emb_ln_b": jnp.zeros((hidden,), jnp.float32),
        "layers": [],
        # pooler + classifier stay f32 (tiny GEMMs run in XLA per perf review)
        "pool_w": nrm((hidden, hidden), jnp.float32),
        "pool_b": jnp.zeros((hidden,), jnp.float32),
        "fc_w": nrm((hidden, num_classes), jnp.float32),
        "fc_b": jnp.zeros((num_classes,), jnp.float32),
    }
    for _ in range(layers):
        p["layers"].append({
            "wq": nrm((hidden, hidden)), "bq": jnp.zeros((hidden,), jnp.float32),
            "wk": nrm((hidden, hidden)), "bk": jnp.zeros((hidden,), jnp.float32),
            "wv": nrm((hidden, hidden)), "bv": jnp.zeros((hidden,), jnp.float32),
            "wo": nrm((hidden, hidden)), "bo": jnp.zeros((hidden,), jnp.float32),
            "ln1_g": jnp.ones((hidden,), jnp.float32),
            "ln1_b": jnp.zeros((hidden,), jnp.float32),
            "w1": nrm((hidden, inter)), "b1": jnp.zeros((inter,), jnp.float32),
            "w2": nrm((inter, hidden)), "b2": jnp.zeros((hidden,), jnp.float32),
            "ln2_g": jnp.ones((hidden,), jnp.float32),
            "ln2_b": jnp.zeros((hidden,), jnp.float32),
        })
    return p


# ----------------------------------------------------------------------------
# Model forward  (Model.forward: BERT encoder -> pooled [CLS] -> fc classifier)
# ----------------------------------------------------------------------------
def model_forward(params, input_ids, token_type_ids, attention_mask, *, num_heads):
    B, S = input_ids.shape
    H = params["word_emb"].shape[1]
    dh = H // num_heads
    scale = 1.0 / float(dh) ** 0.5

    # Embedding gathers are XLA glue; LayerNorm is a Pallas kernel.
    emb = (jnp.take(params["word_emb"], input_ids, axis=0)
           + params["pos_emb"][None, :S, :]
           + jnp.take(params["type_emb"], token_type_ids, axis=0))
    h = layernorm(emb.reshape(B * S, H), params["emb_ln_g"], params["emb_ln_b"])

    for lp in params["layers"]:
        # Q/K/V projections; (B*S, H) -> (B, S, H) reshape is free (no transpose).
        q = dense(h, lp["wq"], lp["bq"]).reshape(B, S, H)
        k = dense(h, lp["wk"], lp["bk"]).reshape(B, S, H)
        v = dense(h, lp["wv"], lp["bv"]).reshape(B, S, H)
        ctx = flash_attention(q, k, v, attention_mask, scale,
                              num_heads=num_heads).reshape(B * S, H)
        # Attention output projection + residual + LayerNorm fused into one kernel.
        h = dense_ln(ctx, lp["wo"], lp["bo"], residual=h,
                     gamma=lp["ln1_g"], beta=lp["ln1_b"])
        ff = dense(h, lp["w1"], lp["b1"], activation="gelu")
        # FFN down projection + residual + LayerNorm fused.
        h = dense_ln(ff, lp["w2"], lp["b2"], residual=h,
                     gamma=lp["ln2_g"], beta=lp["ln2_b"])

    # Pooler + classifier: tiny (B, H) GEMMs — left to XLA per perf review
    # (grid extent ~B is too small for a useful pallas_call on any generation).
    cls = h.reshape(B, S, H)[:, 0, :].astype(jnp.float32)
    pooled = jnp.tanh(cls @ params["pool_w"] + params["pool_b"])
    logits = pooled @ params["fc_w"] + params["fc_b"]
    return logits


if __name__ == "__main__":
    # Small synthetic config (stands in for config.bert_path / hidden_size / num_classes)
    B, S = 2, 8
    HIDDEN, NUM_HEADS, LAYERS, INTER = 32, 4, 2, 64
    VOCAB, MAX_POS, TYPE_VOCAB, NUM_CLASSES = 128, 16, 2, 3

    key = jax.random.PRNGKey(0)
    pkey, ikey = jax.random.split(key)
    params = init_params(pkey, vocab_size=VOCAB, max_pos=MAX_POS,
                         type_vocab=TYPE_VOCAB, hidden=HIDDEN, inter=INTER,
                         layers=LAYERS, num_classes=NUM_CLASSES)

    # x = (context_ids, seq_len, mask); forward uses x[0] and x[2]
    input_ids = jax.random.randint(ikey, (B, S), 0, VOCAB, dtype=jnp.int32)
    token_type_ids = jnp.zeros((B, S), jnp.int32)
    attention_mask = jnp.concatenate(
        [jnp.ones((B, S - 2), jnp.int32), jnp.zeros((B, 2), jnp.int32)], axis=1)

    fwd = jax.jit(functools.partial(model_forward, num_heads=NUM_HEADS))
    logits = fwd(params, input_ids, token_type_ids, attention_mask)
    jax.block_until_ready(logits)
    assert logits.shape == (B, NUM_CLASSES)
    print("KERNEL_OK")
</pallas_src>

<mosaic_0001>
module attributes {stable_mosaic.version = 11 : i64} {
  func.func @_ln_kernel(%arg0: i32, %arg1: memref<16x32xf32, #tpu.memory_space<vmem>>, %arg2: memref<1x32xf32, #tpu.memory_space<vmem>>, %arg3: memref<1x32xf32, #tpu.memory_space<vmem>>, %arg4: memref<16x32xbf16, #tpu.memory_space<vmem>>) attributes {dimension_semantics = [#tpu.dimension_semantics<parallel>], iteration_bounds = array<i64: 1>, scalar_prefetch = 0 : i64, scratch_operands = 0 : i64, tpu.core_type = #tpu.core_type<tc>, window_params = [{transform_indices = @transform_0, window_bounds = array<i64: 16, 32>}, {pipeline_mode = #tpu.pipeline_mode<synchronous>, transform_indices = @transform_1, window_bounds = array<i64: 1, 32>}, {pipeline_mode = #tpu.pipeline_mode<synchronous>, transform_indices = @transform_2, window_bounds = array<i64: 1, 32>}, {transform_indices = @transform_3, window_bounds = array<i64: 16, 32>}]} {
    %c0 = arith.constant 0 : index
    %c0_0 = arith.constant 0 : index
    %0 = vector.load %arg1[%c0, %c0_0] : memref<16x32xf32, #tpu.memory_space<vmem>>, vector<16x32xf32>
    %cst = arith.constant dense<0.000000e+00> : vector<16xf32>
    %1 = vector.multi_reduction <add>, %0, %cst [1] : vector<16x32xf32> to vector<16xf32>
    %2 = vector.shape_cast %1 : vector<16xf32> to vector<16x1xf32>
    %cst_1 = arith.constant 3.200000e+01 : f32
    %3 = vector.broadcast %cst_1 : f32 to vector<16x1xf32>
    %4 = arith.divf %2, %3 : vector<16x1xf32>
    %5 = vector.broadcast %4 : vector<16x1xf32> to vector<16x32xf32>
    %6 = arith.subf %0, %5 : vector<16x32xf32>
    %7 = arith.mulf %6, %6 : vector<16x32xf32>
    %cst_2 = arith.constant dense<0.000000e+00> : vector<16xf32>
    %8 = vector.multi_reduction <add>, %7, %cst_2 [1] : vector<16x32xf32> to vector<16xf32>
    %9 = vector.shape_cast %8 : vector<16xf32> to vector<16x1xf32>
    %cst_3 = arith.constant 3.200000e+01 : f32
    %10 = vector.broadcast %cst_3 : f32 to vector<16x1xf32>
    %11 = arith.divf %9, %10 : vector<16x1xf32>
    %cst_4 = arith.constant 9.99999996E-13 : f32
    %12 = vector.broadcast %cst_4 : f32 to vector<16x1xf32>
    %13 = arith.addf %11, %12 : vector<16x1xf32>
    %14 = math.rsqrt %13 : vector<16x1xf32>
    %15 = vector.broadcast %14 : vector<16x1xf32> to vector<16x32xf32>
    %16 = arith.mulf %6, %15 : vector<16x32xf32>
    %c0_5 = arith.constant 0 : index
    %c0_6 = arith.constant 0 : index
    %17 = vector.load %arg2[%c0_5, %c0_6] : memref<1x32xf32, #tpu.memory_space<vmem>>, vector<1x32xf32>
    %18 = vector.broadcast %17 : vector<1x32xf32> to vector<16x32xf32>
    %19 = arith.mulf %16, %18 : vector<16x32xf32>
    %c0_7 = arith.constant 0 : index
    %c0_8 = arith.constant 0 : index
    %20 = vector.load %arg3[%c0_7, %c0_8] : memref<1x32xf32, #tpu.memory_space<vmem>>, vector<1x32xf32>
    %21 = vector.broadcast %20 : vector<1x32xf32> to vector<16x32xf32>
    %22 = arith.addf %19, %21 : vector<16x32xf32>
    %23 = arith.truncf %22 : vector<16x32xf32> to vector<16x32xbf16>
    %c0_9 = arith.constant 0 : index
    %c0_10 = arith.constant 0 : index
    %24 = vector.load %arg4[%c0_9, %c0_10] : memref<16x32xbf16, #tpu.memory_space<vmem>>, vector<16x32xbf16>
    tpu.vector_store %arg4[%c0_9, %c0_10], %23 {strides = array<i32>} : memref<16x32xbf16, #tpu.memory_space<vmem>>, vector<16x32xbf16>,
    return
  }
  func.func @transform_0(%arg0: i32) -> (i32, i32) {
    %c0_i32 = arith.constant 0 : i32
    %c0_i32_0 = arith.constant 0 : i32
    return %arg0, %c0_i32 : i32, i32
  }
  func.func @transform_1(%arg0: i32) -> (i32, i32) {
    %c0_i32 = arith.constant 0 : i32
    %c0_i32_0 = arith.constant 0 : i32
    %c0_i32_1 = arith.constant 0 : i32
    return %c0_i32, %c0_i32_0 : i32, i32
  }
  func.func @transform_2(%arg0: i32) -> (i32, i32) {
    %c0_i32 = arith.constant 0 : i32
    %c0_i32_0 = arith.constant 0 : i32
    %c0_i32_1 = arith.constant 0 : i32
    return %c0_i32, %c0_i32_0 : i32, i32
  }
  func.func @transform_3(%arg0: i32) -> (i32, i32) {
    %c0_i32 = arith.constant 0 : i32
    %c0_i32_0 = arith.constant 0 : i32
    return %arg0, %c0_i32 : i32, i32
  }
}

module attributes {stable_mosaic.version = 11 : i64} {
  func.func @_dense_fullk_kernel(%arg0: i32, %arg1: i32, %arg2: memref<16x32xbf16, #tpu.memory_space<vmem>>, %arg3: memref<32x32xbf16, #tpu.memory_space<vmem>>, %arg4: memref<1x32xf32, #tpu.memory_space<vmem>>, %arg5: memref<16x32xbf16, #tpu.memory_space<vmem>>) attributes {dimension_semantics = [#tpu.dimension_semantics<parallel>, #tpu.dimension_semantics<parallel>], iteration_bounds = array<i64: 1, 1>, scalar_prefetch = 0 : i64, scratch_operands = 0 : i64, tpu.core_type = #tpu.core_type<tc>, window_params = [{transform_indices = @transform_0, window_bounds = array<i64: 16, 32>}, {transform_indices = @transform_1, window_bounds = array<i64: 32, 32>}, {transform_indices = @transform_2, window_bounds = array<i64: 1, 32>}, {transform_indices = @transform_3, window_bounds = array<i64: 16, 32>}]} {
    %c0 = arith.constant 0 : index
    %c0_0 = arith.constant 0 : index
    %0 = vector.load %arg2[%c0, %c0_0] : memref<16x32xbf16, #tpu.memory_space<vmem>>, vector<16x32xbf16>
    %c0_1 = arith.constant 0 : index
    %c0_2 = arith.constant 0 : index
    %1 = vector.load %arg3[%c0_1, %c0_2] : memref<32x32xbf16, #tpu.memory_space<vmem>>, vector<32x32xbf16>
    %cst = arith.constant dense<0.000000e+00> : vector<16x32xf32>
    %2 = tpu.matmul %0, %1, %cst {dimension_numbers = #tpu.dot_dimension_numbers<[1], [0], [0], [1], [0, 0, 1, 1], [], []>} : vector<16x32xbf16>, vector<32x32xbf16>, vector<16x32xf32> -> vector<16x32xf32>
    %c0_3 = arith.constant 0 : index
    %c0_4 = arith.constant 0 : index
    %3 = vector.load %arg4[%c0_3, %c0_4] : memref<1x32xf32, #tpu.memory_space<vmem>>, vector<1x32xf32>
    %4 = vector.broadcast %3 : vector<1x32xf32> to vector<16x32xf32>
    %5 = arith.addf %2, %4 : vector<16x32xf32>
    %6 = arith.truncf %5 : vector<16x32xf32> to vector<16x32xbf16>
    %c0_5 = arith.constant 0 : index
    %c0_6 = arith.constant 0 : index
    %7 = vector.load %arg5[%c0_5, %c0_6] : memref<16x32xbf16, #tpu.memory_space<vmem>>, vector<16x32xbf16>
    tpu.vector_store %arg5[%c0_5, %c0_6], %6 {strides = array<i32>} : memref<16x32xbf16, #tpu.memory_space<vmem>>, vector<16x32xbf16>,
    return
  }
  func.func @transform_0(%arg0: i32, %arg1: i32) -> (i32, i32) {
    %c0_i32 = arith.constant 0 : i32
    %c0_i32_0 = arith.constant 0 : i32
    return %arg0, %c0_i32 : i32, i32
  }
  func.func @transform_1(%arg0: i32, %arg1: i32) -> (i32, i32) {
    %c0_i32 = arith.constant 0 : i32
    %c0_i32_0 = arith.constant 0 : i32
    return %c0_i32, %arg1 : i32, i32
  }
  func.func @transform_2(%arg0: i32, %arg1: i32) -> (i32, i32) {
    %c0_i32 = arith.constant 0 : i32
    %c0_i32_0 = arith.constant 0 : i32
    return %c0_i32, %arg1 : i32, i32
  }
  func.func @transform_3(%arg0: i32, %arg1: i32) -> (i32, i32) {
    %c0_i32 = arith.constant 0 : i32
    return %arg0, %arg1 : i32, i32
  }
}

module attributes {stable_mosaic.version = 11 : i64} {
  func.func @_dense_ln_kernel(%arg0: i32, %arg1: memref<16x32xbf16, #tpu.memory_space<vmem>>, %arg2: memref<32x32xbf16, #tpu.memory_space<vmem>>, %arg3: memref<1x32xf32, #tpu.memory_space<vmem>>, %arg4: memref<16x32xbf16, #tpu.memory_space<vmem>>, %arg5: memref<1x32xf32, #tpu.memory_space<vmem>>, %arg6: memref<1x32xf32, #tpu.memory_space<vmem>>, %arg7: memref<16x32xbf16, #tpu.memory_space<vmem>>) attributes {dimension_semantics = [#tpu.dimension_semantics<parallel>], iteration_bounds = array<i64: 1>, scalar_prefetch = 0 : i64, scratch_operands = 0 : i64, tpu.core_type = #tpu.core_type<tc>, window_params = [{transform_indices = @transform_0, window_bounds = array<i64: 16, 32>}, {pipeline_mode = #tpu.pipeline_mode<synchronous>, transform_indices = @transform_1, window_bounds = array<i64: 32, 32>}, {pipeline_mode = #tpu.pipeline_mode<synchronous>, transform_indices = @transform_2, window_bounds = array<i64: 1, 32>}, {transform_indices = @transform_3, window_bounds = array<i64: 16, 32>}, {pipeline_mode = #tpu.pipeline_mode<synchronous>, transform_indices = @transform_4, window_bounds = array<i64: 1, 32>}, {pipeline_mode = #tpu.pipeline_mode<synchronous>, transform_indices = @transform_5, window_bounds = array<i64: 1, 32>}, {transform_indices = @transform_6, window_bounds = array<i64: 16, 32>}]} {
    %c0 = arith.constant 0 : index
    %c0_0 = arith.constant 0 : index
    %0 = vector.load %arg1[%c0, %c0_0] : memref<16x32xbf16, #tpu.memory_space<vmem>>, vector<16x32xbf16>
    %c0_1 = arith.constant 0 : index
    %c0_2 = arith.constant 0 : index
    %1 = vector.load %arg2[%c0_1, %c0_2] : memref<32x32xbf16, #tpu.memory_space<vmem>>, vector<32x32xbf16>
    %cst = arith.constant dense<0.000000e+00> : vector<16x32xf32>
    %2 = tpu.matmul %0, %1, %cst {dimension_numbers = #tpu.dot_dimension_numbers<[1], [0], [0], [1], [0, 0, 1, 1], [], []>} : vector<16x32xbf16>, vector<32x32xbf16>, vector<16x32xf32> -> vector<16x32xf32>
    %c0_3 = arith.constant 0 : index
    %c0_4 = arith.constant 0 : index
    %3 = vector.load %arg3[%c0_3, %c0_4] : memref<1x32xf32, #tpu.memory_space<vmem>>, vector<1x32xf32>
    %4 = vector.broadcast %3 : vector<1x32xf32> to vector<16x32xf32>
    %5 = arith.addf %2, %4 : vector<16x32xf32>
    %c0_5 = arith.constant 0 : index
    %c0_6 = arith.constant 0 : index
    %6 = vector.load %arg4[%c0_5, %c0_6] : memref<16x32xbf16, #tpu.memory_space<vmem>>, vector<16x32xbf16>
    %7 = arith.extf %6 : vector<16x32xbf16> to vector<16x32xf32>
    %8 = arith.addf %5, %7 : vector<16x32xf32>
    %cst_7 = arith.constant dense<0.000000e+00> : vector<16xf32>
    %9 = vector.multi_reduction <add>, %8, %cst_7 [1] : vector<16x32xf32> to vector<16xf32>
    %10 = vector.shape_cast %9 : vector<16xf32> to vector<16x1xf32>
    %cst_8 = arith.constant 3.200000e+01 : f32
    %11 = vector.broadcast %cst_8 : f32 to vector<16x1xf32>
    %12 = arith.divf %10, %11 : vector<16x1xf32>
    %13 = vector.broadcast %12 : vector<16x1xf32> to vector<16x32xf32>
    %14 = arith.subf %8, %13 : vector<16x32xf32>
    %15 = arith.mulf %14, %14 : vector<16x32xf32>
    %cst_9 = arith.constant dense<0.000000e+00> : vector<16xf32>
    %16 = vector.multi_reduction <add>, %15, %cst_9 [1] : vector<16x32xf32> to vector<16xf32>
    %17 = vector.shape_cast %16 : vector<16xf32> to vector<16x1xf32>
    %cst_10 = arith.constant 3.200000e+01 : f32
    %18 = vector.broadcast %cst_10 : f32 to vector<16x1xf32>
    %19 = arith.divf %17, %18 : vector<16x1xf32>
    %cst_11 = arith.constant 9.99999996E-13 : f32
    %20 = vector.broadcast %cst_11 : f32 to vector<16x1xf32>
    %21 = arith.addf %19, %20 : vector<16x1xf32>
    %22 = math.rsqrt %21 : vector<16x1xf32>
    %23 = vector.broadcast %22 : vector<16x1xf32> to vector<16x32xf32>
    %24 = arith.mulf %14, %23 : vector<16x32xf32>
    %c0_12 = arith.constant 0 : index
    %c0_13 = arith.constant 0 : index
    %25 = vector.load %arg5[%c0_12, %c0_13] : memref<1x32xf32, #tpu.memory_space<vmem>>, vector<1x32xf32>
    %26 = vector.broadcast %25 : vector<1x32xf32> to vector<16x32xf32>
    %27 = arith.mulf %24, %26 : vector<16x32xf32>
    %c0_14 = arith.constant 0 : index
    %c0_15 = arith.constant 0 : index
    %28 = vector.load %arg6[%c0_14, %c0_15] : memref<1x32xf32, #tpu.memory_space<vmem>>, vector<1x32xf32>
    %29 = vector.broadcast %28 : vector<1x32xf32> to vector<16x32xf32>
    %30 = arith.addf %27, %29 : vector<16x32xf32>
    %31 = arith.truncf %30 : vector<16x32xf32> to vector<16x32xbf16>
    %c0_16 = arith.constant 0 : index
    %c0_17 = arith.constant 0 : index
    %32 = vector.load %arg7[%c0_16, %c0_17] : memref<16x32xbf16, #tpu.memory_space<vmem>>, vector<16x32xbf16>
    tpu.vector_store %arg7[%c0_16, %c0_17], %31 {strides = array<i32>} : memref<16x32xbf16, #tpu.memory_space<vmem>>, vector<16x32xbf16>,
    return
  }
  func.func @transform_0(%arg0: i32) -> (i32, i32) {
    %c0_i32 = arith.constant 0 : i32
    %c0_i32_0 = arith.constant 0 : i32
    return %arg0, %c0_i32 : i32, i32
  }
  func.func @transform_1(%arg0: i32) -> (i32, i32) {
    %c0_i32 = arith.constant 0 : i32
    %c0_i32_0 = arith.constant 0 : i32
    %c0_i32_1 = arith.constant 0 : i32
    return %c0_i32, %c0_i32_0 : i32, i32
  }
  func.func @transform_2(%arg0: i32) -> (i32, i32) {
    %c0_i32 = arith.constant 0 : i32
    %c0_i32_0 = arith.constant 0 : i32
    %c0_i32_1 = arith.constant 0 : i32
    return %c0_i32, %c0_i32_0 : i32, i32
  }
  func.func @transform_3(%arg0: i32) -> (i32, i32) {
    %c0_i32 = arith.constant 0 : i32
    %c0_i32_0 = arith.constant 0 : i32
    return %arg0, %c0_i32 : i32, i32
  }
  func.func @transform_4(%arg0: i32) -> (i32, i32) {
    %c0_i32 = arith.constant 0 : i32
    %c0_i32_0 = arith.constant 0 : i32
    %c0_i32_1 = arith.constant 0 : i32
    return %c0_i32, %c0_i32_0 : i32, i32
  }
  func.func @transform_5(%arg0: i32) -> (i32, i32) {
    %c0_i32 = arith.constant 0 : i32
    %c0_i32_0 = arith.constant 0 : i32
    %c0_i32_1 = arith.constant 0 : i32
    return %c0_i32, %c0_i32_0 : i32, i32
  }
  func.func @transform_6(%arg0: i32) -> (i32, i32) {
    %c0_i32 = arith.constant 0 : i32
    %c0_i32_0 = arith.constant 0 : i32
    return %arg0, %c0_i32 : i32, i32
  }
}

module attributes {stable_mosaic.version = 11 : i64} {
  func.func @_flash_attn_kernel(%arg0: i32, %arg1: i32, %arg2: i32, %arg3: memref<2x1xi32, #tpu.memory_space<smem>>, %arg4: memref<1x8x32xbf16, #tpu.memory_space<vmem>>, %arg5: memref<1x8x32xbf16, #tpu.memory_space<vmem>>, %arg6: memref<1x8x32xbf16, #tpu.memory_space<vmem>>, %arg7: memref<1x1x8xf32, #tpu.memory_space<vmem>>, %arg8: memref<1x8x32xbf16, #tpu.memory_space<vmem>>, %arg9: memref<4x8x1xf32, #tpu.memory_space<vmem>>, %arg10: memref<4x8x1xf32, #tpu.memory_space<vmem>>, %arg11: memref<8x32xf32, #tpu.memory_space<vmem>>) attributes {dimension_semantics = [#tpu.dimension_semantics<parallel>, #tpu.dimension_semantics<parallel>, #tpu.dimension_semantics<arbitrary>], iteration_bounds = array<i64: 2, 1, 1>, scalar_prefetch = 1 : i64, scratch_operands = 3 : i64, tpu.core_type = #tpu.core_type<tc>, window_params = [{transform_indices = @transform_0, window_bounds = array<i64: 1, 8, 32>}, {transform_indices = @transform_1, window_bounds = array<i64: 1, 8, 32>}, {transform_indices = @transform_2, window_bounds = array<i64: 1, 8, 32>}, {transform_indices = @transform_3, window_bounds = array<i64: 1, 1, 8>}, {transform_indices = @transform_4, window_bounds = array<i64: 1, 8, 32>}]} {
    %c0_i32 = arith.constant 0 : i32
    %0 = arith.cmpi eq, %arg2, %c0_i32 : i32
    %1 = arith.extui %0 : i1 to i32
    %c0_i32_0 = arith.constant 0 : i32
    %2 = arith.cmpi ne, %1, %c0_i32_0 : i32
    scf.if %2 {
      %cst = arith.constant -1.000000e+30 : f32
      %12 = vector.broadcast %cst : f32 to vector<4x8x1xf32>
      %c0 = arith.constant 0 : index
      %c0_5 = arith.constant 0 : index
      %c0_6 = arith.constant 0 : index
      %13 = vector.load %arg9[%c0, %c0_5, %c0_6] : memref<4x8x1xf32, #tpu.memory_space<vmem>>, vector<4x8x1xf32>
      tpu.vector_store %arg9[%c0, %c0_5, %c0_6], %12 {strides = array<i32>} : memref<4x8x1xf32, #tpu.memory_space<vmem>>, vector<4x8x1xf32>,
      %cst_7 = arith.constant 0.000000e+00 : f32
      %14 = vector.broadcast %cst_7 : f32 to vector<4x8x1xf32>
      %c0_8 = arith.constant 0 : index
      %c0_9 = arith.constant 0 : index
      %c0_10 = arith.constant 0 : index
      %15 = vector.load %arg10[%c0_8, %c0_9, %c0_10] : memref<4x8x1xf32, #tpu.memory_space<vmem>>, vector<4x8x1xf32>
      tpu.vector_store %arg10[%c0_8, %c0_9, %c0_10], %14 {strides = array<i32>} : memref<4x8x1xf32, #tpu.memory_space<vmem>>, vector<4x8x1xf32>,
      %cst_11 = arith.constant 0.000000e+00 : f32
      %16 = vector.broadcast %cst_11 : f32 to vector<8x32xf32>
      %c0_12 = arith.constant 0 : index
      %c0_13 = arith.constant 0 : index
      %17 = vector.load %arg11[%c0_12, %c0_13] : memref<8x32xf32, #tpu.memory_space<vmem>>, vector<8x32xf32>
      tpu.vector_store %arg11[%c0_12, %c0_13], %16 {strides = array<i32>} : memref<8x32xf32, #tpu.memory_space<vmem>>, vector<8x32xf32>,
    } else {
    }
    %3 = arith.index_cast %arg0 : i32 to index
    %4 = arith.index_cast %arg2 : i32 to index
    %5 = memref.load %arg3[%3, %4] : memref<2x1xi32, #tpu.memory_space<smem>>
    %c0_i32_1 = arith.constant 0 : i32
    %6 = arith.cmpi ne, %5, %c0_i32_1 : i32
    %7 = arith.extui %6 : i1 to i32
    %c0_i32_2 = arith.constant 0 : i32
    %8 = arith.cmpi ne, %7, %c0_i32_2 : i32
    scf.if %8 {
      %c0 = arith.constant 0 : index
      %c0_5 = arith.constant 0 : index
      %c0_6 = arith.constant 0 : index
      %12 = vector.load %arg4[%c0, %c0_5, %c0_6] : memref<1x8x32xbf16, #tpu.memory_space<vmem>>, vector<1x8x32xbf16>
      %13 = vector.shape_cast %12 : vector<1x8x32xbf16> to vector<8x32xbf16>
      %c0_7 = arith.constant 0 : index
      %c0_8 = arith.constant 0 : index
      %c0_9 = arith.constant 0 : index
      %14 = vector.load %arg5[%c0_7, %c0_8, %c0_9] : memref<1x8x32xbf16, #tpu.memory_space<vmem>>, vector<1x8x32xbf16>
      %15 = vector.shape_cast %14 : vector<1x8x32xbf16> to vector<8x32xbf16>
      %c0_10 = arith.constant 0 : index
      %c0_11 = arith.constant 0 : index
      %c0_12 = arith.constant 0 : index
      %16 = vector.load %arg6[%c0_10, %c0_11, %c0_12] : memref<1x8x32xbf16, #tpu.memory_space<vmem>>, vector<1x8x32xbf16>
      %17 = vector.shape_cast %16 : vector<1x8x32xbf16> to vector<8x32xbf16>
      %c0_13 = arith.constant 0 : index
      %c0_14 = arith.constant 0 : index
      %c0_15 = arith.constant 0 : index
      %18 = vector.load %arg7[%c0_13, %c0_14, %c0_15] : memref<1x1x8xf32, #tpu.memory_space<vmem>>, vector<1x1x8xf32>
      %19 = vector.shape_cast %18 : vector<1x1x8xf32> to vector<1x8xf32>
      %20 = vector.extract_strided_slice %13 {offsets = [0, 0], sizes = [8, 8], strides = [1, 1]} : vector<8x32xbf16> to vector<8x8xbf16>
      %21 = vector.extract_strided_slice %15 {offsets = [0, 0], sizes = [8, 8], strides = [1, 1]} : vector<8x32xbf16> to vector<8x8xbf16>
      %22 = vector.extract_strided_slice %17 {offsets = [0, 0], sizes = [8, 8], strides = [1, 1]} : vector<8x32xbf16> to vector<8x8xbf16>
      %cst = arith.constant dense<0.000000e+00> : vector<8x8xf32>
      %23 = tpu.matmul %20, %21, %cst {dimension_numbers = #tpu.dot_dimension_numbers<[1], [1], [0], [0], [0, 0, 1, 0], [], []>} : vector<8x8xbf16>, vector<8x8xbf16>, vector<8x8xf32> -> vector<8x8xf32>
      %cst_16 = arith.constant 0.353553385 : f32
      %24 = vector.broadcast %cst_16 : f32 to vector<8x8xf32>
      %25 = arith.mulf %23, %24 : vector<8x8xf32>
      %26 = vector.broadcast %19 : vector<1x8xf32> to vector<8x8xf32>
      %27 = arith.addf %25, %26 : vector<8x8xf32>
      %c0_17 = arith.constant 0 : index
      %c0_18 = arith.constant 0 : index
      %c0_19 = arith.constant 0 : index
      %28 = vector.load %arg9[%c0_17, %c0_18, %c0_19] : memref<4x8x1xf32, #tpu.memory_space<vmem>>, vector<1x8x1xf32>
      %29 = vector.shape_cast %28 : vector<1x8x1xf32> to vector<8x1xf32>
      %cst_20 = arith.constant dense<0xFF800000> : vector<8xf32>
      %30 = vector.multi_reduction <maximumf>, %27, %cst_20 [1] : vector<8x8xf32> to vector<8xf32>
      %31 = vector.shape_cast %30 : vector<8xf32> to vector<8x1xf32>
      %32 = arith.maximumf %29, %31 : vector<8x1xf32>
      %33 = arith.subf %29, %32 : vector<8x1xf32>
      %34 = math.exp %33 : vector<8x1xf32>
      %35 = vector.broadcast %32 : vector<8x1xf32> to vector<8x8xf32>
      %36 = arith.subf %27, %35 : vector<8x8xf32>
      %37 = math.exp %36 : vector<8x8xf32>
      %c0_21 = arith.constant 0 : index
      %c0_22 = arith.constant 0 : index
      %c0_23 = arith.constant 0 : index
      %38 = vector.load %arg10[%c0_21, %c0_22, %c0_23] : memref<4x8x1xf32, #tpu.memory_space<vmem>>, vector<1x8x1xf32>
      %39 = vector.shape_cast %38 : vector<1x8x1xf32> to vector<8x1xf32>
      %40 = arith.mulf %34, %39 : vector<8x1xf32>
      %cst_24 = arith.constant dense<0.000000e+00> : vector<8xf32>
      %41 = vector.multi_reduction <add>, %37, %cst_24 [1] : vector<8x8xf32> to vector<8xf32>
      %42 = vector.shape_cast %41 : vector<8xf32> to vector<8x1xf32>
      %43 = arith.addf %40, %42 : vector<8x1xf32>
      %c0_25 = arith.constant 0 : index
      %c0_26 = arith.constant 0 : index
      %c0_27 = arith.constant 0 : index
      %44 = vector.load %arg10[%c0_25, %c0_26, %c0_27] : memref<4x8x1xf32, #tpu.memory_space<vmem>>, vector<1x8x1xf32>
      %45 = vector.shape_cast %44 : vector<1x8x1xf32> to vector<8x1xf32>
      %46 = vector.shape_cast %43 : vector<8x1xf32> to vector<1x8x1xf32>
      tpu.vector_store %arg10[%c0_25, %c0_26, %c0_27], %46 {strides = array<i32>} : memref<4x8x1xf32, #tpu.memory_space<vmem>>, vector<1x8x1xf32>,
      %c0_28 = arith.constant 0 : index
      %c0_29 = arith.constant 0 : index
      %c0_30 = arith.constant 0 : index
      %47 = vector.load %arg9[%c0_28, %c0_29, %c0_30] : memref<4x8x1xf32, #tpu.memory_space<vmem>>, vector<1x8x1xf32>
      %48 = vector.shape_cast %47 : vector<1x8x1xf32> to vector<8x1xf32>
      %49 = vector.shape_cast %32 : vector<8x1xf32> to vector<1x8x1xf32>
      tpu.vector_store %arg9[%c0_28, %c0_29, %c0_30], %49 {strides = array<i32>} : memref<4x8x1xf32, #tpu.memory_space<vmem>>, vector<1x8x1xf32>,
      %50 = vector.shape_cast %34 : vector<8x1xf32> to vector<8x1xf32>
      %51 = vector.broadcast %50 : vector<8x1xf32> to vector<8x8xf32>
      %52 = arith.truncf %37 : vector<8x8xf32> to vector<8x8xbf16>
      %cst_31 = arith.constant dense<0.000000e+00> : vector<8x8xf32>
      %53 = tpu.matmul %52, %22, %cst_31 {dimension_numbers = #tpu.dot_dimension_numbers<[1], [0], [0], [1], [0, 0, 1, 1], [], []>} : vector<8x8xbf16>, vector<8x8xbf16>, vector<8x8xf32> -> vector<8x8xf32>
      %54 = vector.extract_strided_slice %13 {offsets = [0, 8], sizes = [8, 8], strides = [1, 1]} : vector<8x32xbf16> to vector<8x8xbf16>
      %55 = vector.extract_strided_slice %15 {offsets = [0, 8], sizes = [8, 8], strides = [1, 1]} : vector<8x32xbf16> to vector<8x8xbf16>
      %56 = vector.extract_strided_slice %17 {offsets = [0, 8], sizes = [8, 8], strides = [1, 1]} : vector<8x32xbf16> to vector<8x8xbf16>
      %cst_32 = arith.constant dense<0.000000e+00> : vector<8x8xf32>
      %57 = tpu.matmul %54, %55, %cst_32 {dimension_numbers = #tpu.dot_dimension_numbers<[1], [1], [0], [0], [0, 0, 1, 0], [], []>} : vector<8x8xbf16>, vector<8x8xbf16>, vector<8x8xf32> -> vector<8x8xf32>
      %cst_33 = arith.constant 0.353553385 : f32
      %58 = vector.broadcast %cst_33 : f32 to vector<8x8xf32>
      %59 = arith.mulf %57, %58 : vector<8x8xf32>
      %60 = vector.broadcast %19 : vector<1x8xf32> to vector<8x8xf32>
      %61 = arith.addf %59, %60 : vector<8x8xf32>
      %c1 = arith.constant 1 : index
      %c0_34 = arith.constant 0 : index
      %c0_35 = arith.constant 0 : index
      %62 = vector.load %arg9[%c1, %c0_34, %c0_35] : memref<4x8x1xf32, #tpu.memory_space<vmem>>, vector<1x8x1xf32>
      %63 = vector.shape_cast %62 : vector<1x8x1xf32> to vector<8x1xf32>
      %cst_36 = arith.constant dense<0xFF800000> : vector<8xf32>
      %64 = vector.multi_reduction <maximumf>, %61, %cst_36 [1] : vector<8x8xf32> to vector<8xf32>
      %65 = vector.shape_cast %64 : vector<8xf32> to vector<8x1xf32>
      %66 = arith.maximumf %63, %65 : vector<8x1xf32>
      %67 = arith.subf %63, %66 : vector<8x1xf32>
      %68 = math.exp %67 : vector<8x1xf32>
      %69 = vector.broadcast %66 : vector<8x1xf32> to vector<8x8xf32>
      %70 = arith.subf %61, %69 : vector<8x8xf32>
      %71 = math.exp %70 : vector<8x8xf32>
      %c1_37 = arith.constant 1 : index
      %c0_38 = arith.constant 0 : index
      %c0_39 = arith.constant 0 : index
      %72 = vector.load %arg10[%c1_37, %c0_38, %c0_39] : memref<4x8x1xf32, #tpu.memory_space<vmem>>, vector<1x8x1xf32>
      %73 = vector.shape_cast %72 : vector<1x8x1xf32> to vector<8x1xf32>
      %74 = arith.mulf %68, %73 : vector<8x1xf32>
      %cst_40 = arith.constant dense<0.000000e+00> : vector<8xf32>
      %75 = vector.multi_reduction <add>, %71, %cst_40 [1] : vector<8x8xf32> to vector<8xf32>
      %76 = vector.shape_cast %75 : vector<8xf32> to vector<8x1xf32>
      %77 = arith.addf %74, %76 : vector<8x1xf32>
      %c1_41 = arith.constant 1 : index
      %c0_42 = arith.constant 0 : index
      %c0_43 = arith.constant 0 : index
      %78 = vector.load %arg10[%c1_41, %c0_42, %c0_43] : memref<4x8x1xf32, #tpu.memory_space<vmem>>, vector<1x8x1xf32>
      %79 = vector.shape_cast %78 : vector<1x8x1xf32> to vector<8x1xf32>
      %80 = vector.shape_cast %77 : vector<8x1xf32> to vector<1x8x1xf32>
      tpu.vector_store %arg10[%c1_41, %c0_42, %c0_43], %80 {strides = array<i32>} : memref<4x8x1xf32, #tpu.memory_space<vmem>>, vector<1x8x1xf32>,
      %c1_44 = arith.constant 1 : index
      %c0_45 = arith.constant 0 : index
      %c0_46 = arith.constant 0 : index
      %81 = vector.load %arg9[%c1_44, %c0_45, %c0_46] : memref<4x8x1xf32, #tpu.memory_space<vmem>>, vector<1x8x1xf32>
      %82 = vector.shape_cast %81 : vector<1x8x1xf32> to vector<8x1xf32>
      %83 = vector.shape_cast %66 : vector<8x1xf32> to vector<1x8x1xf32>
      tpu.vector_store %arg9[%c1_44, %c0_45, %c0_46], %83 {strides = array<i32>} : memref<4x8x1xf32, #tpu.memory_space<vmem>>, vector<1x8x1xf32>,
      %84 = vector.shape_cast %68 : vector<8x1xf32> to vector<8x1xf32>
      %85 = vector.broadcast %84 : vector<8x1xf32> to vector<8x8xf32>
      %86 = arith.truncf %71 : vector<8x8xf32> to vector<8x8xbf16>
      %cst_47 = arith.constant dense<0.000000e+00> : vector<8x8xf32>
      %87 = tpu.matmul %86, %56, %cst_47 {dimension_numbers = #tpu.dot_dimension_numbers<[1], [0], [0], [1], [0, 0, 1, 1], [], []>} : vector<8x8xbf16>, vector<8x8xbf16>, vector<8x8xf32> -> vector<8x8xf32>
      %88 = vector.extract_strided_slice %13 {offsets = [0, 16], sizes = [8, 8], strides = [1, 1]} : vector<8x32xbf16> to vector<8x8xbf16>
      %89 = vector.extract_strided_slice %15 {offsets = [0, 16], sizes = [8, 8], strides = [1, 1]} : vector<8x32xbf16> to vector<8x8xbf16>
      %90 = vector.extract_strided_slice %17 {offsets = [0, 16], sizes = [8, 8], strides = [1, 1]} : vector<8x32xbf16> to vector<8x8xbf16>
      %cst_48 = arith.constant dense<0.000000e+00> : vector<8x8xf32>
      %91 = tpu.matmul %88, %89, %cst_48 {dimension_numbers = #tpu.dot_dimension_numbers<[1], [1], [0], [0], [0, 0, 1, 0], [], []>} : vector<8x8xbf16>, vector<8x8xbf16>, vector<8x8xf32> -> vector<8x8xf32>
      %cst_49 = arith.constant 0.353553385 : f32
      %92 = vector.broadcast %cst_49 : f32 to vector<8x8xf32>
      %93 = arith.mulf %91, %92 : vector<8x8xf32>
      %94 = vector.broadcast %19 : vector<1x8xf32> to vector<8x8xf32>
      %95 = arith.addf %93, %94 : vector<8x8xf32>
      %c2 = arith.constant 2 : index
      %c0_50 = arith.constant 0 : index
      %c0_51 = arith.constant 0 : index
      %96 = vector.load %arg9[%c2, %c0_50, %c0_51] : memref<4x8x1xf32, #tpu.memory_space<vmem>>, vector<1x8x1xf32>
      %97 = vector.shape_cast %96 : vector<1x8x1xf32> to vector<8x1xf32>
      %cst_52 = arith.constant dense<0xFF800000> : vector<8xf32>
      %98 = vector.multi_reduction <maximumf>, %95, %cst_52 [1] : vector<8x8xf32> to vector<8xf32>
      %99 = vector.shape_cast %98 : vector<8xf32> to vector<8x1xf32>
      %100 = arith.maximumf %97, %99 : vector<8x1xf32>
      %101 = arith.subf %97, %100 : vector<8x1xf32>
      %102 = math.exp %101 : vector<8x1xf32>
      %103 = vector.broadcast %100 : vector<8x1xf32> to vector<8x8xf32>
      %104 = arith.subf %95, %103 : vector<8x8xf32>
      %105 = math.exp %104 : vector<8x8xf32>
      %c2_53 = arith.constant 2 : index
      %c0_54 = arith.constant 0 : index
      %c0_55 = arith.constant 0 : index
      %106 = vector.load %arg10[%c2_53, %c0_54, %c0_55] : memref<4x8x1xf32, #tpu.memory_space<vmem>>, vector<1x8x1xf32>
      %107 = vector.shape_cast %106 : vector<1x8x1xf32> to vector<8x1xf32>
      %108 = arith.mulf %102, %107 : vector<8x1xf32>
      %cst_56 = arith.constant dense<0.000000e+00> : vector<8xf32>
      %109 = vector.multi_reduction <add>, %105, %cst_56 [1] : vector<8x8xf32> to vector<8xf32>
      %110 = vector.shape_cast %109 : vector<8xf32> to vector<8x1xf32>
      %111 = arith.addf %108, %110 : vector<8x1xf32>
      %c2_57 = arith.constant 2 : index
      %c0_58 = arith.constant 0 : index
      %c0_59 = arith.constant 0 : index
      %112 = vector.load %arg10[%c2_57, %c0_58, %c0_59] : memref<4x8x1xf32, #tpu.memory_space<vmem>>, vector<1x8x1xf32>
      %113 = vector.shape_cast %112 : vector<1x8x1xf32> to vector<8x1xf32>
      %114 = vector.shape_cast %111 : vector<8x1xf32> to vector<1x8x1xf32>
      tpu.vector_store %arg10[%c2_57, %c0_58, %c0_59], %114 {strides = array<i32>} : memref<4x8x1xf32, #tpu.memory_space<vmem>>, vector<1x8x1xf32>,
      %c2_60 = arith.constant 2 : index
      %c0_61 = arith.constant 0 : index
      %c0_62 = arith.constant 0 : index
      %115 = vector.load %arg9[%c2_60, %c0_61, %c0_62] : memref<4x8x1xf32, #tpu.memory_space<vmem>>, vector<1x8x1xf32>
      %116 = vector.shape_cast %115 : vector<1x8x1xf32> to vector<8x1xf32>
      %117 = vector.shape_cast %100 : vector<8x1xf32> to vector<1x8x1xf32>
      tpu.vector_store %arg9[%c2_60, %c0_61, %c0_62], %117 {strides = array<i32>} : memref<4x8x1xf32, #tpu.memory_space<vmem>>, vector<1x8x1xf32>,
      %118 = vector.shape_cast %102 : vector<8x1xf32> to vector<8x1xf32>
      %119 = vector.broadcast %118 : vector<8x1xf32> to vector<8x8xf32>
      %120 = arith.truncf %105 : vector<8x8xf32> to vector<8x8xbf16>
      %cst_63 = arith.constant dense<0.000000e+00> : vector<8x8xf32>
      %121 = tpu.matmul %120, %90, %cst_63 {dimension_numbers = #tpu.dot_dimension_numbers<[1], [0], [0], [1], [0, 0, 1, 1], [], []>} : vector<8x8xbf16>, vector<8x8xbf16>, vector<8x8xf32> -> vector<8x8xf32>
      %122 = vector.extract_strided_slice %13 {offsets = [0, 24], sizes = [8, 8], strides = [1, 1]} : vector<8x32xbf16> to vector<8x8xbf16>
      %123 = vector.extract_strided_slice %15 {offsets = [0, 24], sizes = [8, 8], strides = [1, 1]} : vector<8x32xbf16> to vector<8x8xbf16>
      %124 = vector.extract_strided_slice %17 {offsets = [0, 24], sizes = [8, 8], strides = [1, 1]} : vector<8x32xbf16> to vector<8x8xbf16>
      %cst_64 = arith.constant dense<0.000000e+00> : vector<8x8xf32>
      %125 = tpu.matmul %122, %123, %cst_64 {dimension_numbers = #tpu.dot_dimension_numbers<[1], [1], [0], [0], [0, 0, 1, 0], [], []>} : vector<8x8xbf16>, vector<8x8xbf16>, vector<8x8xf32> -> vector<8x8xf32>
      %cst_65 = arith.constant 0.353553385 : f32
      %126 = vector.broadcast %cst_65 : f32 to vector<8x8xf32>
      %127 = arith.mulf %125, %126 : vector<8x8xf32>
      %128 = vector.broadcast %19 : vector<1x8xf32> to vector<8x8xf32>
      %129 = arith.addf %127, %128 : vector<8x8xf32>
      %c3 = arith.constant 3 : index
      %c0_66 = arith.constant 0 : index
      %c0_67 = arith.constant 0 : index
      %130 = vector.load %arg9[%c3, %c0_66, %c0_67] : memref<4x8x1xf32, #tpu.memory_space<vmem>>, vector<1x8x1xf32>
      %131 = vector.shape_cast %130 : vector<1x8x1xf32> to vector<8x1xf32>
      %cst_68 = arith.constant dense<0xFF800000> : vector<8xf32>
      %132 = vector.multi_reduction <maximumf>, %129, %cst_68 [1] : vector<8x8xf32> to vector<8xf32>
      %133 = vector.shape_cast %132 : vector<8xf32> to vector<8x1xf32>
      %134 = arith.maximumf %131, %133 : vector<8x1xf32>
      %135 = arith.subf %131, %134 : vector<8x1xf32>
      %136 = math.exp %135 : vector<8x1xf32>
      %137 = vector.broadcast %134 : vector<8x1xf32> to vector<8x8xf32>
      %138 = arith.subf %129, %137 : vector<8x8xf32>
      %139 = math.exp %138 : vector<8x8xf32>
      %c3_69 = arith.constant 3 : index
      %c0_70 = arith.constant 0 : index
      %c0_71 = arith.constant 0 : index
      %140 = vector.load %arg10[%c3_69, %c0_70, %c0_71] : memref<4x8x1xf32, #tpu.memory_space<vmem>>, vector<1x8x1xf32>
      %141 = vector.shape_cast %140 : vector<1x8x1xf32> to vector<8x1xf32>
      %142 = arith.mulf %136, %141 : vector<8x1xf32>
      %cst_72 = arith.constant dense<0.000000e+00> : vector<8xf32>
      %143 = vector.multi_reduction <add>, %139, %cst_72 [1] : vector<8x8xf32> to vector<8xf32>
      %144 = vector.shape_cast %143 : vector<8xf32> to vector<8x1xf32>
      %145 = arith.addf %142, %144 : vector<8x1xf32>
      %c3_73 = arith.constant 3 : index
      %c0_74 = arith.constant 0 : index
      %c0_75 = arith.constant 0 : index
      %146 = vector.load %arg10[%c3_73, %c0_74, %c0_75] : memref<4x8x1xf32, #tpu.memory_space<vmem>>, vector<1x8x1xf32>
      %147 = vector.shape_cast %146 : vector<1x8x1xf32> to vector<8x1xf32>
      %148 = vector.shape_cast %145 : vector<8x1xf32> to vector<1x8x1xf32>
      tpu.vector_store %arg10[%c3_73, %c0_74, %c0_75], %148 {strides = array<i32>} : memref<4x8x1xf32, #tpu.memory_space<vmem>>, vector<1x8x1xf32>,
      %c3_76 = arith.constant 3 : index
      %c0_77 = arith.constant 0 : index
      %c0_78 = arith.constant 0 : index
      %149 = vector.load %arg9[%c3_76, %c0_77, %c0_78] : memref<4x8x1xf32, #tpu.memory_space<vmem>>, vector<1x8x1xf32>
      %150 = vector.shape_cast %149 : vector<1x8x1xf32> to vector<8x1xf32>
      %151 = vector.shape_cast %134 : vector<8x1xf32> to vector<1x8x1xf32>
      tpu.vector_store %arg9[%c3_76, %c0_77, %c0_78], %151 {strides = array<i32>} : memref<4x8x1xf32, #tpu.memory_space<vmem>>, vector<1x8x1xf32>,
      %152 = vector.shape_cast %136 : vector<8x1xf32> to vector<8x1xf32>
      %153 = vector.broadcast %152 : vector<8x1xf32> to vector<8x8xf32>
      %154 = arith.truncf %139 : vector<8x8xf32> to vector<8x8xbf16>
      %cst_79 = arith.constant dense<0.000000e+00> : vector<8x8xf32>
      %155 = tpu.matmul %154, %124, %cst_79 {dimension_numbers = #tpu.dot_dimension_numbers<[1], [0], [0], [1], [0, 0, 1, 1], [], []>} : vector<8x8xbf16>, vector<8x8xbf16>, vector<8x8xf32> -> vector<8x8xf32>
      %156 = tpu.concatenate %51, %85, %119, %153 in 1 : vector<8x8xf32>, vector<8x8xf32>, vector<8x8xf32>, vector<8x8xf32> -> vector<8x32xf32>
      %c0_80 = arith.constant 0 : index
      %c0_81 = arith.constant 0 : index
      %157 = vector.load %arg11[%c0_80, %c0_81] : memref<8x32xf32, #tpu.memory_space<vmem>>, vector<8x32xf32>
      %158 = arith.mulf %156, %157 : vector<8x32xf32>
      %159 = tpu.concatenate %53, %87, %121, %155 in 1 : vector<8x8xf32>, vector<8x8xf32>, vector<8x8xf32>, vector<8x8xf32> -> vector<8x32xf32>
      %160 = arith.addf %158, %159 : vector<8x32xf32>
      %c0_82 = arith.constant 0 : index
      %c0_83 = arith.constant 0 : index
      %161 = vector.load %arg11[%c0_82, %c0_83] : memref<8x32xf32, #tpu.memory_space<vmem>>, vector<8x32xf32>
      tpu.vector_store %arg11[%c0_82, %c0_83], %160 {strides = array<i32>} : memref<8x32xf32, #tpu.memory_space<vmem>>, vector<8x32xf32>,
    } else {
    }
    %c0_i32_3 = arith.constant 0 : i32
    %9 = arith.cmpi eq, %arg2, %c0_i32_3 : i32
    %10 = arith.extui %9 : i1 to i32
    %c0_i32_4 = arith.constant 0 : i32
    %11 = arith.cmpi ne, %10, %c0_i32_4 : i32
    scf.if %11 {
      %c0 = arith.constant 0 : index
      %c0_5 = arith.constant 0 : index
      %c0_6 = arith.constant 0 : index
      %12 = vector.load %arg10[%c0, %c0_5, %c0_6] : memref<4x8x1xf32, #tpu.memory_space<vmem>>, vector<1x8x1xf32>
      %13 = vector.shape_cast %12 : vector<1x8x1xf32> to vector<8x1xf32>
      %14 = tpu.reciprocal %13 {approx = true} : vector<8x1xf32> -> vector<8x1xf32>
      %15 = vector.shape_cast %14 : vector<8x1xf32> to vector<8x1xf32>
      %16 = vector.broadcast %15 : vector<8x1xf32> to vector<8x8xf32>
      %c1 = arith.constant 1 : index
      %c0_7 = arith.constant 0 : index
      %c0_8 = arith.constant 0 : index
      %17 = vector.load %arg10[%c1, %c0_7, %c0_8] : memref<4x8x1xf32, #tpu.memory_space<vmem>>, vector<1x8x1xf32>
      %18 = vector.shape_cast %17 : vector<1x8x1xf32> to vector<8x1xf32>
      %19 = tpu.reciprocal %18 {approx = true} : vector<8x1xf32> -> vector<8x1xf32>
      %20 = vector.shape_cast %19 : vector<8x1xf32> to vector<8x1xf32>
      %21 = vector.broadcast %20 : vector<8x1xf32> to vector<8x8xf32>
      %c2 = arith.constant 2 : index
      %c0_9 = arith.constant 0 : index
      %c0_10 = arith.constant 0 : index
      %22 = vector.load %arg10[%c2, %c0_9, %c0_10] : memref<4x8x1xf32, #tpu.memory_space<vmem>>, vector<1x8x1xf32>
      %23 = vector.shape_cast %22 : vector<1x8x1xf32> to vector<8x1xf32>
      %24 = tpu.reciprocal %23 {approx = true} : vector<8x1xf32> -> vector<8x1xf32>
      %25 = vector.shape_cast %24 : vector<8x1xf32> to vector<8x1xf32>
      %26 = vector.broadcast %25 : vector<8x1xf32> to vector<8x8xf32>
      %c3 = arith.constant 3 : index
      %c0_11 = arith.constant 0 : index
      %c0_12 = arith.constant 0 : index
      %27 = vector.load %arg10[%c3, %c0_11, %c0_12] : memref<4x8x1xf32, #tpu.memory_space<vmem>>, vector<1x8x1xf32>
      %28 = vector.shape_cast %27 : vector<1x8x1xf32> to vector<8x1xf32>
      %29 = tpu.reciprocal %28 {approx = true} : vector<8x1xf32> -> vector<8x1xf32>
      %30 = vector.shape_cast %29 : vector<8x1xf32> to vector<8x1xf32>
      %31 = vector.broadcast %30 : vector<8x1xf32> to vector<8x8xf32>
      %32 = tpu.concatenate %16, %21, %26, %31 in 1 : vector<8x8xf32>, vector<8x8xf32>, vector<8x8xf32>, vector<8x8xf32> -> vector<8x32xf32>
      %c0_13 = arith.constant 0 : index
      %c0_14 = arith.constant 0 : index
      %33 = vector.load %arg11[%c0_13, %c0_14] : memref<8x32xf32, #tpu.memory_space<vmem>>, vector<8x32xf32>
      %34 = arith.mulf %33, %32 : vector<8x32xf32>
      %35 = arith.truncf %34 : vector<8x32xf32> to vector<8x32xbf16>
      %c0_15 = arith.constant 0 : index
      %c0_16 = arith.constant 0 : index
      %c0_17 = arith.constant 0 : index
      %36 = vector.load %arg8[%c0_15, %c0_16, %c0_17] : memref<1x8x32xbf16, #tpu.memory_space<vmem>>, vector<1x8x32xbf16>
      %37 = vector.shape_cast %36 : vector<1x8x32xbf16> to vector<8x32xbf16>
      %38 = vector.shape_cast %35 : vector<8x32xbf16> to vector<1x8x32xbf16>
      tpu.vector_store %arg8[%c0_15, %c0_16, %c0_17], %38 {strides = array<i32>} : memref<1x8x32xbf16, #tpu.memory_space<vmem>>, vector<1x8x32xbf16>,
    } else {
    }
    return
  }
  func.func @transform_0(%arg0: i32, %arg1: i32, %arg2: i32, %arg3: memref<2x1xi32, #tpu.memory_space<smem>>) -> (i32, i32, i32) {
    %c0_i32 = arith.constant 0 : i32
    %c0_i32_0 = arith.constant 0 : i32
    return %arg0, %arg1, %c0_i32 : i32, i32, i32
  }
  func.func @transform_1(%arg0: i32, %arg1: i32, %arg2: i32, %arg3: memref<2x1xi32, #tpu.memory_space<smem>>) -> (i32, i32, i32) {
    %c0_i32 = arith.constant 0 : i32
    %c0_i32_0 = arith.constant 0 : i32
    return %arg0, %arg2, %c0_i32 : i32, i32, i32
  }
  func.func @transform_2(%arg0: i32, %arg1: i32, %arg2: i32, %arg3: memref<2x1xi32, #tpu.memory_space<smem>>) -> (i32, i32, i32) {
    %c0_i32 = arith.constant 0 : i32
    %c0_i32_0 = arith.constant 0 : i32
    return %arg0, %arg2, %c0_i32 : i32, i32, i32
  }
  func.func @transform_3(%arg0: i32, %arg1: i32, %arg2: i32, %arg3: memref<2x1xi32, #tpu.memory_space<smem>>) -> (i32, i32, i32) {
    %c0_i32 = arith.constant 0 : i32
    %c0_i32_0 = arith.constant 0 : i32
    return %arg0, %c0_i32, %arg2 : i32, i32, i32
  }
  func.func @transform_4(%arg0: i32, %arg1: i32, %arg2: i32, %arg3: memref<2x1xi32, #tpu.memory_space<smem>>) -> (i32, i32, i32) {
    %c0_i32 = arith.constant 0 : i32
    %c0_i32_0 = arith.constant 0 : i32
    return %arg0, %arg1, %c0_i32 : i32, i32, i32
  }
}

module attributes {stable_mosaic.version = 11 : i64} {
  func.func @_dense_fullk_kernel(%arg0: i32, %arg1: i32, %arg2: memref<16x32xbf16, #tpu.memory_space<vmem>>, %arg3: memref<32x64xbf16, #tpu.memory_space<vmem>>, %arg4: memref<1x64xf32, #tpu.memory_space<vmem>>, %arg5: memref<16x64xbf16, #tpu.memory_space<vmem>>) attributes {dimension_semantics = [#tpu.dimension_semantics<parallel>, #tpu.dimension_semantics<parallel>], iteration_bounds = array<i64: 1, 1>, scalar_prefetch = 0 : i64, scratch_operands = 0 : i64, tpu.core_type = #tpu.core_type<tc>, window_params = [{transform_indices = @transform_0, window_bounds = array<i64: 16, 32>}, {transform_indices = @transform_1, window_bounds = array<i64: 32, 64>}, {transform_indices = @transform_2, window_bounds = array<i64: 1, 64>}, {transform_indices = @transform_3, window_bounds = array<i64: 16, 64>}]} {
    %c0 = arith.constant 0 : index
    %c0_0 = arith.constant 0 : index
    %0 = vector.load %arg2[%c0, %c0_0] : memref<16x32xbf16, #tpu.memory_space<vmem>>, vector<16x32xbf16>
    %c0_1 = arith.constant 0 : index
    %c0_2 = arith.constant 0 : index
    %1 = vector.load %arg3[%c0_1, %c0_2] : memref<32x64xbf16, #tpu.memory_space<vmem>>, vector<32x64xbf16>
    %cst = arith.constant dense<0.000000e+00> : vector<16x64xf32>
    %2 = tpu.matmul %0, %1, %cst {dimension_numbers = #tpu.dot_dimension_numbers<[1], [0], [0], [1], [0, 0, 1, 1], [], []>} : vector<16x32xbf16>, vector<32x64xbf16>, vector<16x64xf32> -> vector<16x64xf32>
    %c0_3 = arith.constant 0 : index
    %c0_4 = arith.constant 0 : index
    %3 = vector.load %arg4[%c0_3, %c0_4] : memref<1x64xf32, #tpu.memory_space<vmem>>, vector<1x64xf32>
    %4 = vector.broadcast %3 : vector<1x64xf32> to vector<16x64xf32>
    %5 = arith.addf %2, %4 : vector<16x64xf32>
    %cst_5 = arith.constant 5.000000e-01 : f32
    %6 = vector.broadcast %cst_5 : f32 to vector<16x64xf32>
    %7 = arith.mulf %6, %5 : vector<16x64xf32>
    %cst_6 = arith.constant 0.707106769 : f32
    %8 = vector.broadcast %cst_6 : f32 to vector<16x64xf32>
    %9 = arith.mulf %5, %8 : vector<16x64xf32>
    %cst_7 = arith.constant 0.000000e+00 : f32
    %10 = vector.broadcast %cst_7 : f32 to vector<16x64xf32>
    %11 = arith.cmpf oge, %9, %10 : vector<16x64xf32>
    %cst_8 = arith.constant 1.000000e+00 : f32
    %cst_9 = arith.constant -1.000000e+00 : f32
    %12 = vector.broadcast %cst_8 : f32 to vector<16x64xf32>
    %13 = vector.broadcast %cst_9 : f32 to vector<16x64xf32>
    %14 = arith.select %11, %12, %13 : vector<16x64xi1>, vector<16x64xf32>
    %15 = math.absf %9 : vector<16x64xf32>
    %cst_10 = arith.constant 0.327591091 : f32
    %16 = vector.broadcast %cst_10 : f32 to vector<16x64xf32>
    %17 = arith.mulf %16, %15 : vector<16x64xf32>
    %cst_11 = arith.constant 1.000000e+00 : f32
    %18 = vector.broadcast %cst_11 : f32 to vector<16x64xf32>
    %19 = arith.addf %18, %17 : vector<16x64xf32>
    %20 = tpu.reciprocal %19 {approx = true} : vector<16x64xf32> -> vector<16x64xf32>
    %cst_12 = arith.constant 1.06140542 : f32
    %21 = vector.broadcast %cst_12 : f32 to vector<16x64xf32>
    %22 = arith.mulf %21, %20 : vector<16x64xf32>
    %cst_13 = arith.constant -1.45315206 : f32
    %23 = vector.broadcast %cst_13 : f32 to vector<16x64xf32>
    %24 = arith.addf %22, %23 : vector<16x64xf32>
    %25 = arith.mulf %24, %20 : vector<16x64xf32>
    %cst_14 = arith.constant 1.42141378 : f32
    %26 = vector.broadcast %cst_14 : f32 to vector<16x64xf32>
    %27 = arith.addf %25, %26 : vector<16x64xf32>
    %28 = arith.mulf %27, %20 : vector<16x64xf32>
    %cst_15 = arith.constant -0.284496725 : f32
    %29 = vector.broadcast %cst_15 : f32 to vector<16x64xf32>
    %30 = arith.addf %28, %29 : vector<16x64xf32>
    %31 = arith.mulf %30, %20 : vector<16x64xf32>
    %cst_16 = arith.constant 0.254829586 : f32
    %32 = vector.broadcast %cst_16 : f32 to vector<16x64xf32>
    %33 = arith.addf %31, %32 : vector<16x64xf32>
    %34 = arith.mulf %33, %20 : vector<16x64xf32>
    %cst_17 = arith.constant 0.000000e+00 : f32
    %35 = vector.broadcast %cst_17 : f32 to vector<16x64xf32>
    %36 = arith.subf %35, %15 : vector<16x64xf32>
    %37 = arith.mulf %36, %15 : vector<16x64xf32>
    %38 = math.exp %37 : vector<16x64xf32>
    %39 = arith.mulf %34, %38 : vector<16x64xf32>
    %cst_18 = arith.constant 1.000000e+00 : f32
    %40 = vector.broadcast %cst_18 : f32 to vector<16x64xf32>
    %41 = arith.subf %40, %39 : vector<16x64xf32>
    %42 = arith.mulf %14, %41 : vector<16x64xf32>
    %cst_19 = arith.constant 1.000000e+00 : f32
    %43 = vector.broadcast %cst_19 : f32 to vector<16x64xf32>
    %44 = arith.addf %43, %42 : vector<16x64xf32>
    %45 = arith.mulf %7, %44 : vector<16x64xf32>
    %46 = arith.truncf %45 : vector<16x64xf32> to vector<16x64xbf16>
    %c0_20 = arith.constant 0 : index
    %c0_21 = arith.constant 0 : index
    %47 = vector.load %arg5[%c0_20, %c0_21] : memref<16x64xbf16, #tpu.memory_space<vmem>>, vector<16x64xbf16>
    tpu.vector_store %arg5[%c0_20, %c0_21], %46 {strides = array<i32>} : memref<16x64xbf16, #tpu.memory_space<vmem>>, vector<16x64xbf16>,
    return
  }
  func.func @transform_0(%arg0: i32, %arg1: i32) -> (i32, i32) {
    %c0_i32 = arith.constant 0 : i32
    %c0_i32_0 = arith.constant 0 : i32
    return %arg0, %c0_i32 : i32, i32
  }
  func.func @transform_1(%arg0: i32, %arg1: i32) -> (i32, i32) {
    %c0_i32 = arith.constant 0 : i32
    %c0_i32_0 = arith.constant 0 : i32
    return %c0_i32, %arg1 : i32, i32
  }
  func.func @transform_2(%arg0: i32, %arg1: i32) -> (i32, i32) {
    %c0_i32 = arith.constant 0 : i32
    %c0_i32_0 = arith.constant 0 : i32
    return %c0_i32, %arg1 : i32, i32
  }
  func.func @transform_3(%arg0: i32, %arg1: i32) -> (i32, i32) {
    %c0_i32 = arith.constant 0 : i32
    return %arg0, %arg1 : i32, i32
  }
}

module attributes {stable_mosaic.version = 11 : i64} {
  func.func @_dense_ln_kernel(%arg0: i32, %arg1: memref<16x64xbf16, #tpu.memory_space<vmem>>, %arg2: memref<64x32xbf16, #tpu.memory_space<vmem>>, %arg3: memref<1x32xf32, #tpu.memory_space<vmem>>, %arg4: memref<16x32xbf16, #tpu.memory_space<vmem>>, %arg5: memref<1x32xf32, #tpu.memory_space<vmem>>, %arg6: memref<1x32xf32, #tpu.memory_space<vmem>>, %arg7: memref<16x32xbf16, #tpu.memory_space<vmem>>) attributes {dimension_semantics = [#tpu.dimension_semantics<parallel>], iteration_bounds = array<i64: 1>, scalar_prefetch = 0 : i64, scratch_operands = 0 : i64, tpu.core_type = #tpu.core_type<tc>, window_params = [{transform_indices = @transform_0, window_bounds = array<i64: 16, 64>}, {pipeline_mode = #tpu.pipeline_mode<synchronous>, transform_indices = @transform_1, window_bounds = array<i64: 64, 32>}, {pipeline_mode = #tpu.pipeline_mode<synchronous>, transform_indices = @transform_2, window_bounds = array<i64: 1, 32>}, {transform_indices = @transform_3, window_bounds = array<i64: 16, 32>}, {pipeline_mode = #tpu.pipeline_mode<synchronous>, transform_indices = @transform_4, window_bounds = array<i64: 1, 32>}, {pipeline_mode = #tpu.pipeline_mode<synchronous>, transform_indices = @transform_5, window_bounds = array<i64: 1, 32>}, {transform_indices = @transform_6, window_bounds = array<i64: 16, 32>}]} {
    %c0 = arith.constant 0 : index
    %c0_0 = arith.constant 0 : index
    %0 = vector.load %arg1[%c0, %c0_0] : memref<16x64xbf16, #tpu.memory_space<vmem>>, vector<16x64xbf16>
    %c0_1 = arith.constant 0 : index
    %c0_2 = arith.constant 0 : index
    %1 = vector.load %arg2[%c0_1, %c0_2] : memref<64x32xbf16, #tpu.memory_space<vmem>>, vector<64x32xbf16>
    %cst = arith.constant dense<0.000000e+00> : vector<16x32xf32>
    %2 = tpu.matmul %0, %1, %cst {dimension_numbers = #tpu.dot_dimension_numbers<[1], [0], [0], [1], [0, 0, 1, 1], [], []>} : vector<16x64xbf16>, vector<64x32xbf16>, vector<16x32xf32> -> vector<16x32xf32>
    %c0_3 = arith.constant 0 : index
    %c0_4 = arith.constant 0 : index
    %3 = vector.load %arg3[%c0_3, %c0_4] : memref<1x32xf32, #tpu.memory_space<vmem>>, vector<1x32xf32>
    %4 = vector.broadcast %3 : vector<1x32xf32> to vector<16x32xf32>
    %5 = arith.addf %2, %4 : vector<16x32xf32>
    %c0_5 = arith.constant 0 : index
    %c0_6 = arith.constant 0 : index
    %6 = vector.load %arg4[%c0_5, %c0_6] : memref<16x32xbf16, #tpu.memory_space<vmem>>, vector<16x32xbf16>
    %7 = arith.extf %6 : vector<16x32xbf16> to vector<16x32xf32>
    %8 = arith.addf %5, %7 : vector<16x32xf32>
    %cst_7 = arith.constant dense<0.000000e+00> : vector<16xf32>
    %9 = vector.multi_reduction <add>, %8, %cst_7 [1] : vector<16x32xf32> to vector<16xf32>
    %10 = vector.shape_cast %9 : vector<16xf32> to vector<16x1xf32>
    %cst_8 = arith.constant 3.200000e+01 : f32
    %11 = vector.broadcast %cst_8 : f32 to vector<16x1xf32>
    %12 = arith.divf %10, %11 : vector<16x1xf32>
    %13 = vector.broadcast %12 : vector<16x1xf32> to vector<16x32xf32>
    %14 = arith.subf %8, %13 : vector<16x32xf32>
    %15 = arith.mulf %14, %14 : vector<16x32xf32>
    %cst_9 = arith.constant dense<0.000000e+00> : vector<16xf32>
    %16 = vector.multi_reduction <add>, %15, %cst_9 [1] : vector<16x32xf32> to vector<16xf32>
    %17 = vector.shape_cast %16 : vector<16xf32> to vector<16x1xf32>
    %cst_10 = arith.constant 3.200000e+01 : f32
    %18 = vector.broadcast %cst_10 : f32 to vector<16x1xf32>
    %19 = arith.divf %17, %18 : vector<16x1xf32>
    %cst_11 = arith.constant 9.99999996E-13 : f32
    %20 = vector.broadcast %cst_11 : f32 to vector<16x1xf32>
    %21 = arith.addf %19, %20 : vector<16x1xf32>
    %22 = math.rsqrt %21 : vector<16x1xf32>
    %23 = vector.broadcast %22 : vector<16x1xf32> to vector<16x32xf32>
    %24 = arith.mulf %14, %23 : vector<16x32xf32>
    %c0_12 = arith.constant 0 : index
    %c0_13 = arith.constant 0 : index
    %25 = vector.load %arg5[%c0_12, %c0_13] : memref<1x32xf32, #tpu.memory_space<vmem>>, vector<1x32xf32>
    %26 = vector.broadcast %25 : vector<1x32xf32> to vector<16x32xf32>
    %27 = arith.mulf %24, %26 : vector<16x32xf32>
    %c0_14 = arith.constant 0 : index
    %c0_15 = arith.constant 0 : index
    %28 = vector.load %arg6[%c0_14, %c0_15] : memref<1x32xf32, #tpu.memory_space<vmem>>, vector<1x32xf32>
    %29 = vector.broadcast %28 : vector<1x32xf32> to vector<16x32xf32>
    %30 = arith.addf %27, %29 : vector<16x32xf32>
    %31 = arith.truncf %30 : vector<16x32xf32> to vector<16x32xbf16>
    %c0_16 = arith.constant 0 : index
    %c0_17 = arith.constant 0 : index
    %32 = vector.load %arg7[%c0_16, %c0_17] : memref<16x32xbf16, #tpu.memory_space<vmem>>, vector<16x32xbf16>
    tpu.vector_store %arg7[%c0_16, %c0_17], %31 {strides = array<i32>} : memref<16x32xbf16, #tpu.memory_space<vmem>>, vector<16x32xbf16>,
    return
  }
  func.func @transform_0(%arg0: i32) -> (i32, i32) {
    %c0_i32 = arith.constant 0 : i32
    %c0_i32_0 = arith.constant 0 : i32
    return %arg0, %c0_i32 : i32, i32
  }
  func.func @transform_1(%arg0: i32) -> (i32, i32) {
    %c0_i32 = arith.constant 0 : i32
    %c0_i32_0 = arith.constant 0 : i32
    %c0_i32_1 = arith.constant 0 : i32
    return %c0_i32, %c0_i32_0 : i32, i32
  }
  func.func @transform_2(%arg0: i32) -> (i32, i32) {
    %c0_i32 = arith.constant 0 : i32
    %c0_i32_0 = arith.constant 0 : i32
    %c0_i32_1 = arith.constant 0 : i32
    return %c0_i32, %c0_i32_0 : i32, i32
  }
  func.func @transform_3(%arg0: i32) -> (i32, i32) {
    %c0_i32 = arith.constant 0 : i32
    %c0_i32_0 = arith.constant 0 : i32
    return %arg0, %c0_i32 : i32, i32
  }
  func.func @transform_4(%arg0: i32) -> (i32, i32) {
    %c0_i32 = arith.constant 0 : i32
    %c0_i32_0 = arith.constant 0 : i32
    %c0_i32_1 = arith.constant 0 : i32
    return %c0_i32, %c0_i32_0 : i32, i32
  }
  func.func @transform_5(%arg0: i32) -> (i32, i32) {
    %c0_i32 = arith.constant 0 : i32
    %c0_i32_0 = arith.constant 0 : i32
    %c0_i32_1 = arith.constant 0 : i32
    return %c0_i32, %c0_i32_0 : i32, i32
  }
  func.func @transform_6(%arg0: i32) -> (i32, i32) {
    %c0_i32 = arith.constant 0 : i32
    %c0_i32_0 = arith.constant 0 : i32
    return %arg0, %c0_i32 : i32, i32
  }
}

</mosaic_0001>

<bundles_post_ra>
// kernel: model_forward.15
= control target key start
LH: loop header
LB: loop body
LE: loop exit
PB: predicated region body
PF: predicated region fallthrough
CT: control target
= control target key end

     0   :  { %vm16_vm0 = vcmask 261120   ;;  %v98_v4 = vmov 32.0   ;;  %vm82_vm6 = vcmask 257024   ;;  %s141_s0 = inlined_call_operand.vmem [shape: f32[16,32], index: 0, kind: input, shape index: {}]   ;;  %s142_s1 = inlined_call_operand.vmem [shape: f32[1,32], index: 1, kind: input, shape index: {}]   ;;  %s143_s2 = inlined_call_operand.vmem [shape: f32[1,32], index: 2, kind: input, shape index: {}]   ;;  %s144_s3 = inlined_call_operand.vmem [shape: bf16[16,32], index: 3, kind: output, shape index: {}]  }
   0x1   :  { %v14_v0 = vld [vmem:[%s141_s0] sm:$0xff]  ;;  %v15_v2 = vld [vmem:[%s141_s0 + $0x8] sm:$0xff]  ;;  %92 = vrcp.f32 %v98_v4 }
   0x2   :  { %v17_v1 = vsel %vm16_vm0, %v14_v0, 0.0  ;;  %v20_v3 = vsel %vm16_vm0, %v15_v2, 0.0  ;;  %v90_v35 = vld [vmem:[%s142_s1] ss:$0 sm:$0xff] }
   0x3   :  { %18 = vadd.xlane.f32.xlu0 %v17_v1  ;;  %v91_v38 = vld [vmem:[%s143_s2] ss:$0 sm:$0xff] }
   0x7   :  { %v93_v5 = vpop.eup %92 }
   0x8   :  { %v24_v6 = vmul.f32 32.0, %v93_v5  ;;  %vm28_vm1 = vweird.f32 %v93_v5 }
   0xa   :  { %v25_v7 = vsub.f32 1.0, %v24_v6 }
   0xb   :  { %21 = vadd.xlane.f32.xlu0 %v20_v3 }
   0xc   :  { %v26_v8 = vmul.f32 %v93_v5, %v25_v7 }
   0xe   :  { %v27_v9 = vadd.f32 %v93_v5, %v26_v8 }
  0x10   :  { %v29_v10 = vsel %vm28_vm1, %v93_v5, %v27_v9 }
  0x76   :  { %v19_v11 = vpop.xlane.xlu0 %18 }
  0x77   :  { %v30_v12 = vmul.f32 %v29_v10, %v19_v11 }
  0x79   :  { %v32_v13 = vsub.f32 %v14_v0, %v30_v12 }
  0x7b   :  { %v34_v14 = vmul.f32 %v32_v13, %v32_v13 }
  0x7d   :  { %v36_v15 = vsel %vm16_vm0, %v34_v14, 0.0 }
  0x7e   :  { %37 = vadd.xlane.f32.xlu1 %v36_v15  ;;  %v22_v16 = vpop.xlane.xlu0 %21 }
  0x7f   :  { %v31_v17 = vmul.f32 %v29_v10, %v22_v16 }
  0x81   :  { %v33_v18 = vsub.f32 %v15_v2, %v31_v17 }
  0x83   :  { %v35_v19 = vmul.f32 %v33_v18, %v33_v18 }
  0x85   :  { %v39_v20 = vsel %vm16_vm0, %v35_v19, 0.0 }
  0x86   :  { %40 = vadd.xlane.f32.xlu1 %v39_v20 }
  0xf1   :  { %v38_v21 = vpop.xlane.xlu1 %37 }
  0xf2   :  { %v42_v22 = vmul.f32 %v38_v21, %v29_v10 }
  0xf4   :  { %v44_v23 = vadd.f32 1e-12, %v42_v22 }
  0xf6   :  { %94 = vrsqrt.f32 %v44_v23  ;;  %vm52_vm3 = vweird.f32 %v44_v23 }
  0xf9   :  { %v41_v24 = vpop.xlane.xlu1 %40 }
  0xfa   :  { %v43_v25 = vmul.f32 %v41_v24, %v29_v10 }
  0xfc   :  { %v95_v26 = vpop.eup %94  ;;  %v45_v27 = vadd.f32 1e-12, %v43_v25 }
  0xfd   :  { %v47_v28 = vmul.f32 %v95_v26, %v44_v23  ;;  %vm53_vm2 = vweird.f32 %v95_v26 }
  0xfe   :  { %96 = vrsqrt.f32 %v45_v27  ;;  %vm54_vm4 = vmor %vm52_vm3, %vm53_vm2  ;;  %vm62_vm7 = vweird.f32 %v45_v27 }
  0xff   :  { %v48_v29 = vmul.f32 %v95_v26, %v47_v28 }
 0x101   :  { %v49_v30 = vmul.f32 0.5, %v48_v29 }
 0x103   :  { %v50_v31 = vsub.f32 1.5, %v49_v30 }
 0x104   :  { %v97_v32 = vpop.eup %96 }
 0x105   :  { %v51_v33 = vmul.f32 %v95_v26, %v50_v31  ;;  %v57_v34 = vmul.f32 %v97_v32, %v45_v27  ;;  %vm63_vm5 = vweird.f32 %v97_v32 }
 0x106   :  { %vm64_vm8 = vmor %vm62_vm7, %vm63_vm5 }
 0x107   :  { %v55_v36 = vsel %vm54_vm4, %v95_v26, %v51_v33  ;;  %v58_v37 = vmul.f32 %v97_v32, %v57_v34 }
 0x108   :  { %v66_v39 = vmul.f32 %v55_v36, %v32_v13 }
 0x109   :  { %v59_v40 = vmul.f32 0.5, %v58_v37 }
 0x10a   :  { %v72_v41 = vmul.f32 %v90_v35, %v66_v39 }
 0x10b   :  { %v60_v42 = vsub.f32 1.5, %v59_v40 }
 0x10c   :  { %v78_v43 = vadd.f32 %v91_v38, %v72_v41 }
 0x10d   :  { %v61_v44 = vmul.f32 %v97_v32, %v60_v42 }
 0x10e   :  { %v80_v45 = vpack.c.bf16 %v78_v43, %v78_v43 }
 0x10f   :  { %v65_v46 = vsel %vm64_vm8, %v97_v32, %v61_v44 }
 0x110   :  { %83 = vst.msk [vmem:[%s144_s3] sm:$0xf] %vm82_vm6, %v80_v45  ;;  %v67_v47 = vmul.f32 %v65_v46, %v33_v18 }
 0x112   :  { %v73_v48 = vmul.f32 %v90_v35, %v67_v47 }
 0x114   :  { %v79_v49 = vadd.f32 %v91_v38, %v73_v48 }
 0x116   :  { %v81_v50 = vpack.c.bf16 %v79_v49, %v79_v49 }
 0x118   :  { %84 = vst.msk [vmem:[%s144_s3 + $0x4] sm:$0xf] %vm82_vm6, %v81_v50 }

// kernel: model_forward.20
= control target key start
LH: loop header
LB: loop body
LE: loop exit
PB: predicated region body
PF: predicated region fallthrough
CT: control target
= control target key end

     0   :  { %vm51_vm0 = vcmask 261120   ;;  %v177_v15 = vmov 32.0   ;;  %vm140_vm6 = vcmask 257024   ;;  %s245_s1 = inlined_call_operand.vmem [shape: bf16[32,32], index: 1, kind: input, shape index: {}]   ;;  %s246_s2 = inlined_call_operand.vmem [shape: f32[1,32], index: 2, kind: input, shape index: {}]   ;;  %s247_s0 = inlined_call_operand.vmem [shape: bf16[16,32], index: 0, kind: input, shape index: {}]   ;;  %s248_s3 = inlined_call_operand.vmem [shape: bf16[16,32], index: 3, kind: input, shape index: {}]   ;;  %s249_s4 = inlined_call_operand.vmem [shape: f32[1,32], index: 4, kind: input, shape index: {}]   ;;  %s250_s5 = inlined_call_operand.vmem [shape: f32[1,32], index: 5, kind: input, shape index: {}]   ;;  %s251_s6 = inlined_call_operand.vmem [shape: bf16[16,32], index: 6, kind: output, shape index: {}]  }
   0x1   :  { %v162_v0 = vld [vmem:[%s245_s1 + $0x8] sm:$0xff]  ;;  %v161_v1 = vld [vmem:[%s245_s1] sm:$0xff]  ;;  %171 = vrcp.f32 %v177_v15 }
   0x2   :  { %61 = vmatpush.bf16.msra.mxu0 %v162_v0  ;;  %v160_v2 = vld [vmem:[%s247_s0] sm:$0xff] }
   0x3   :  { %v164_v3 = vld [vmem:[%s248_s3] sm:$0xff]  }
   0x4   :  { %v168_v4 = vld [vmem:[%s246_s2] ss:$0 sm:$0xff]  ;;  %v165_v5 = vunpack.c.l.bf16 %v164_v3  ;;  %v166_v10 = vunpack.c.h.bf16 %v164_v3 }
   0x5   :  { %v169_v46 = vld [vmem:[%s249_s4] ss:$0 sm:$0xff] }
   0x6   :  { %62 = vmatpush.bf16.msra.mxu0 %v161_v1  ;;  %v170_v49 = vld [vmem:[%s250_s5] ss:$0 sm:$0xff] }
   0x7   :  { %v172_v16 = vpop.eup %171 }
   0x8   :  { %v82_v17 = vmul.f32 32.0, %v172_v16  ;;  %vm86_vm1 = vweird.f32 %v172_v16 }
   0x9   :  { %159 = vmatmul.msk.bf16.vlgmr.msra.gmra.mxu0 %vm51_vm0, %v160_v2 }
   0xa   :  { %v83_v18 = vsub.f32 1.0, %v82_v17 }
   0xc   :  { %v84_v19 = vmul.f32 %v172_v16, %v83_v18 }
   0xe   :  { %v85_v20 = vadd.f32 %v172_v16, %v84_v19 }
  0x10   :  { %v87_v21 = vsel %vm86_vm1, %v172_v16, %v85_v20 }
  0x86   :  { %v64_v6 = vpop.f32.mrf.mxu0 }
  0x87   :  { %v65_v7 = vadd.f32 %v168_v4, %v64_v6 }
  0x89   :  { %v73_v8 = vadd.f32 %v165_v5, %v65_v7 }
  0x8b   :  { %v75_v9 = vsel %vm51_vm0, %v73_v8, 0.0 }
  0x8c   :  { %76 = vadd.xlane.f32.xlu0 %v75_v9 }
  0x8e   :  { %v66_v11 = vpop.f32.mrf.mxu0 }
  0x8f   :  { %v67_v12 = vadd.f32 %v168_v4, %v66_v11 }
  0x91   :  { %v74_v13 = vadd.f32 %v166_v10, %v67_v12 }
  0x93   :  { %v78_v14 = vsel %vm51_vm0, %v74_v13, 0.0 }
  0x94   :  { %79 = vadd.xlane.f32.xlu0 %v78_v14 }
  0xff   :  { %v77_v22 = vpop.xlane.xlu0 %76 }
 0x100   :  { %v88_v23 = vmul.f32 %v87_v21, %v77_v22 }
 0x102   :  { %v90_v24 = vsub.f32 %v73_v8, %v88_v23 }
 0x104   :  { %v92_v25 = vmul.f32 %v90_v24, %v90_v24 }
 0x106   :  { %v94_v26 = vsel %vm51_vm0, %v92_v25, 0.0 }
 0x107   :  { %95 = vadd.xlane.f32.xlu1 %v94_v26  ;;  %v80_v27 = vpop.xlane.xlu0 %79 }
 0x108   :  { %v89_v28 = vmul.f32 %v87_v21, %v80_v27 }
 0x10a   :  { %v91_v29 = vsub.f32 %v74_v13, %v89_v28 }
 0x10c   :  { %v93_v30 = vmul.f32 %v91_v29, %v91_v29 }
 0x10e   :  { %v97_v31 = vsel %vm51_vm0, %v93_v30, 0.0 }
 0x10f   :  { %98 = vadd.xlane.f32.xlu1 %v97_v31 }
 0x17a   :  { %v96_v32 = vpop.xlane.xlu1 %95 }
 0x17b   :  { %v100_v33 = vmul.f32 %v96_v32, %v87_v21 }
 0x17d   :  { %v102_v34 = vadd.f32 1e-12, %v100_v33 }
 0x17f   :  { %173 = vrsqrt.f32 %v102_v34  ;;  %vm110_vm3 = vweird.f32 %v102_v34 }
 0x182   :  { %v99_v35 = vpop.xlane.xlu1 %98 }
 0x183   :  { %v101_v36 = vmul.f32 %v99_v35, %v87_v21 }
 0x185   :  { %v174_v37 = vpop.eup %173  ;;  %v103_v38 = vadd.f32 1e-12, %v101_v36 }
 0x186   :  { %v105_v39 = vmul.f32 %v174_v37, %v102_v34  ;;  %vm111_vm2 = vweird.f32 %v174_v37 }
 0x187   :  { %175 = vrsqrt.f32 %v103_v38  ;;  %vm112_vm4 = vmor %vm110_vm3, %vm111_vm2  ;;  %vm120_vm7 = vweird.f32 %v103_v38 }
 0x188   :  { %v106_v40 = vmul.f32 %v174_v37, %v105_v39 }
 0x18a   :  { %v107_v41 = vmul.f32 0.5, %v106_v40 }
 0x18c   :  { %v108_v42 = vsub.f32 1.5, %v107_v41 }
 0x18d   :  { %v176_v43 = vpop.eup %175 }
 0x18e   :  { %v109_v44 = vmul.f32 %v174_v37, %v108_v42  ;;  %v115_v45 = vmul.f32 %v176_v43, %v103_v38  ;;  %vm121_vm5 = vweird.f32 %v176_v43 }
 0x18f   :  { %vm122_vm8 = vmor %vm120_vm7, %vm121_vm5 }
 0x190   :  { %v113_v47 = vsel %vm112_vm4, %v174_v37, %v109_v44  ;;  %v116_v48 = vmul.f32 %v176_v43, %v115_v45 }
 0x191   :  { %v124_v50 = vmul.f32 %v113_v47, %v90_v24 }
 0x192   :  { %v117_v51 = vmul.f32 0.5, %v116_v48 }
 0x193   :  { %v130_v52 = vmul.f32 %v169_v46, %v124_v50 }
 0x194   :  { %v118_v53 = vsub.f32 1.5, %v117_v51 }
 0x195   :  { %v136_v54 = vadd.f32 %v170_v49, %v130_v52 }
 0x196   :  { %v119_v55 = vmul.f32 %v176_v43, %v118_v53 }
 0x197   :  { %v138_v56 = vpack.c.bf16 %v136_v54, %v136_v54 }
 0x198   :  { %v123_v57 = vsel %vm122_vm8, %v176_v43, %v119_v55 }
 0x199   :  { %141 = vst.msk [vmem:[%s251_s6] sm:$0xf] %vm140_vm6, %v138_v56  ;;  %v125_v58 = vmul.f32 %v123_v57, %v91_v29 }
 0x19b   :  { %v131_v59 = vmul.f32 %v169_v46, %v125_v58 }
 0x19d   :  { %v137_v60 = vadd.f32 %v170_v49, %v131_v59 }
 0x19f   :  { %v139_v61 = vpack.c.bf16 %v137_v60, %v137_v60 }
 0x1a1   :  { %142 = vst.msk [vmem:[%s251_s6 + $0x4] sm:$0xf] %vm140_vm6, %v139_v61 }

// kernel: model_forward.16
= control target key start
LH: loop header
LB: loop body
LE: loop exit
PB: predicated region body
PF: predicated region fallthrough
CT: control target
= control target key end

     0   :  { %vm42_vm0 = vcmask 261120   ;;  %vm62_vm1 = vcmask 257024   ;;  %s124_s1 = inlined_call_operand.vmem [shape: bf16[32,32], index: 1, kind: input, shape index: {}]   ;;  %s125_s2 = inlined_call_operand.vmem [shape: f32[1,32], index: 2, kind: input, shape index: {}]   ;;  %s126_s0 = inlined_call_operand.vmem [shape: bf16[16,32], index: 0, kind: input, shape index: {}]   ;;  %s127_s3 = inlined_call_operand.vmem [shape: bf16[16,32], index: 3, kind: output, shape index: {}]  }
   0x1   :  { %v84_v0 = vld [vmem:[%s124_s1 + $0x8] sm:$0xff]  ;;  %v83_v1 = vld [vmem:[%s124_s1] sm:$0xff] }
   0x2   :  { %52 = vmatpush.bf16.msra.mxu0 %v84_v0  ;;  %v82_v2 = vld [vmem:[%s126_s0] sm:$0xff] }
   0x3   :  { %v85_v3 = vld [vmem:[%s125_s2] ss:$0 sm:$0xff] }
   0x6   :  { %53 = vmatpush.bf16.msra.mxu0 %v83_v1 }
   0x9   :  { %81 = vmatmul.msk.bf16.vlgmr.msra.gmra.mxu0 %vm42_vm0, %v82_v2 }
  0x86   :  { %v55_v4 = vpop.f32.mrf.mxu0 }
  0x87   :  { %v56_v5 = vadd.f32 %v85_v3, %v55_v4 }
  0x89   :  { %v60_v6 = vpack.c.bf16 %v56_v5, %v56_v5 }
  0x8b   :  { %63 = vst.msk [vmem:[%s127_s3] sm:$0xf] %vm62_vm1, %v60_v6 }
  0x8e   :  { %v57_v7 = vpop.f32.mrf.mxu0 }
  0x8f   :  { %v58_v8 = vadd.f32 %v85_v3, %v57_v7 }
  0x91   :  { %v61_v9 = vpack.c.bf16 %v58_v8, %v58_v8 }
  0x93   :  { %64 = vst.msk [vmem:[%s127_s3 + $0x4] sm:$0xf] %vm62_vm1, %v61_v9 }

// kernel: model_forward.19
= control target key start
LH: loop header
LB: loop body
LE: loop exit
PB: predicated region body
PF: predicated region fallthrough
CT: control target
= control target key end

     0   :  { %s985_s21 = smov [#allocation6]   ;;  %s1177_s0 = inlined_call_operand.vmem [shape: s32[2,1], index: 0, kind: input, shape index: {}]   ;;  %s1178_s1 = inlined_call_operand.vmem [shape: bf16[2,8,32], index: 1, kind: input, shape index: {}]   ;;  %s1179_s2 = inlined_call_operand.vmem [shape: bf16[2,8,32], index: 2, kind: input, shape index: {}]   ;;  %s1180_s3 = inlined_call_operand.vmem [shape: bf16[2,8,32], index: 3, kind: input, shape index: {}]   ;;  %s1181_s4 = inlined_call_operand.vmem [shape: f32[2,1,8], index: 4, kind: input, shape index: {}]   ;;  %s1182_s5 = inlined_call_operand.vmem [shape: bf16[2,8,32], index: 5, kind: output, shape index: {}]  }
   0x1   :  { %s11_s20 = sshll.u32 %s1177_s0, 4  ;;  %s12_s20 = int_to_ptr.vmem [resolvable:$true] %s11_s20 }
   0x2   :  { %14 = dma.vmem_to_smem %s12_s20, 32, %s985_s21, [#allocation5] }
   0x3   :  { %971 = dma.done.wait [#allocation5], 32 }
   0x4   :  { %972 = vsyncadd [#allocation5], 4294967264 }
   0x5   :  { %17 = sfence }
   0x6   :  { %s1029_s22 = smov 0   ;;  %s1031_s23 = smov 0  }
   0x7   :  { %s1033_s24 = smov 0  }
   0x8 LB: > { %s42_s0 = sadd.s32 1, %s979_s23  ;;  %p865_p0 = scmp.ge.s32.totalorder %s983_s24, 1  ;;  %s983_s24 = sphi %s1033_s24, %s23_s24   ;;  %s979_s23 = sphi %s1031_s23, %s1184_s23   ;;  %s975_s22 = sphi %s1029_s22, %s1183_s22  }
   0x9   : > { %p44_p1 = scmp.ge.s32.totalorder %s42_s0, 2  ;;  %p237_p2 = scmp.lt.s32.totalorder %s983_s24, 3 }
   0xb   : > { %s1186_s0 = smov (%p44_p1, %s42_s0), 0  ;;  %p238_p3 = pnand %p865_p0, %p237_p2 }
   0xc   : > { %p287_p4 = scmp.lt.s32.totalorder (!%p238_p3), %s975_s22, 1  ;;  %s870_s25 = sshll.u32 (!%p238_p3), %s975_s22, 7 }
   0xd   : > { %241 = sbr.rel (%p238_p3) target bundleno = 1210 (0x4ba), region = 36  ;;  %s344_s26 = sld [smem:[#allocation6 + %s870_s25]] (!%p238_p3) }
  0x12   : > { %vm326_vm0 = vcmask 7168   ;;  %v986_v0 = vmov -1e+30   ;;  %s1188_s22 = smov (!%p287_p4, %s975_s22), 1  ;;  %v987_v1 = vmov 0.0   ;;  %vm335_vm1 = vcmask 261120  }
  0x13   : > { %327 = vst.msk [vmem:[#allocation2] sm:$0xff] %vm326_vm0, %v986_v0  ;;  %s1050_s27 = sshll.u32 %s1188_s22, 2  ;;  %s313_s30 = scalar_lea.vmem %s1181_s4, %s1188_s22 }
  0x14   : > { %328 = vst.msk [vmem:[#allocation2 + $0x8] sm:$0xff] %vm326_vm0, %v986_v0  ;;  %s293_s8 = scalar_lea.vmem %s1178_s1, %s1050_s27  ;;  %s300_s11 = scalar_lea.vmem %s1179_s2, %s1050_s27 }
  0x15   : > { %329 = vst.msk [vmem:[#allocation2 + $0x10] sm:$0xff] %vm326_vm0, %v986_v0  ;;  %s307_s14 = scalar_lea.vmem %s1180_s3, %s1050_s27  ;;  %s320_s17 = scalar_lea.vmem %s1182_s5, %s1050_s27 }
  0x16   : > { %330 = vst.msk [vmem:[#allocation2 + $0x18] sm:$0xff] %vm326_vm0, %v986_v0  ;;  %p871_p5 = scmp.eq.s32.totalorder %s344_s26, 0 }
  0x17   : > { %331 = vst.msk [vmem:[#allocation3] sm:$0xff] %vm326_vm0, %v987_v1  ;;  %s988_s18 = smov (!%p871_p5), 112   ;;  %s989_s19 = smov (!%p871_p5), 104  }
  0x18   : > { %332 = vst.msk [vmem:[#allocation3 + $0x8] sm:$0xff] %vm326_vm0, %v987_v1  ;;  %348 = sbr.rel (%p871_p5) target bundleno = 1067 (0x42b), region = 44  ;;  %s990_s20 = smov (!%p871_p5), 120  }
  0x19   : > { %333 = vst.msk [vmem:[#allocation3 + $0x10] sm:$0xff] %vm326_vm0, %v987_v1  ;;  %s992_s25 = smov (!%p871_p5), 8   ;;  %s993_s26 = smov (!%p871_p5), 16  }
  0x1a   : > { %334 = vst.msk [vmem:[#allocation3 + $0x18] sm:$0xff] %vm326_vm0, %v987_v1  ;;  %s994_s28 = smov (!%p871_p5), 24  }
  0x1b   : > { %336 = vst.msk [vmem:[#allocation4] sm:$0xff] %vm335_vm1, %v987_v1 }
  0x1d   : > { %v350_v2 = vld [vmem:[%s300_s11] sm:$0xf]  ;;  %vm353_vm2 = vcmask 64512   ;;  %v991_v15 = vmov 0   ;;  %vm412_vm3 = vcmask 1043456   ;;  %v1129_v56 = vld [vmem:[#allocation2 + $0x18] sm:$0xff] }
  0x1e   : > { %v358_v3 = vsel %vm353_vm2, %v350_v2, 0  ;;  %v349_v4 = vld [vmem:[%s293_s8] sm:$0xf]  ;;  %v435_v5 = vunpack.c.l.b16 %v350_v2  ;;  %917 = vset.pattern.permute.xlu1 %v991_v15  ;;  %918 = vset.pattern.permute.xlu2 %v991_v15  ;;  %v461_v60 = vld [vmem:[#allocation2 + $0x8] sm:$0xff]  ;;  %v542_v63 = vld [vmem:[#allocation2 + $0x10] sm:$0xff]  ;;  %vm673_vm4 = vcmask 130048  }
  0x1f   : > { %367 = vmatpush.bf16.xpose.msra.mxu0 %v358_v3  ;;  %v1079_v6 = vld [vmem:[%s313_s30] ss:$0 sm:$0xff]  ;;  %v430_v13 = vunpack.c.l.b16 %v349_v4  ;;  %919 = vset.pattern.permute.xlu0 %v991_v15  ;;  %vm675_vm5 = vcmask 195584  }
  0x20   : > { %v436_v9 = vpack.c.b16 %v435_v5, %v435_v5  ;;  %v1087_v16 = vld [vmem:[#allocation2] sm:$0xff] }
  0x21   : > { %v431_v14 = vpack.c.b16 %v430_v13, %v430_v13  ;;  %v351_v23 = vld [vmem:[%s307_s14] sm:$0xf] }
  0x22   : > { %518 = vrot.lane.b32.xlu2 %v436_v9, %s988_s18  ;;  %v414_v25 = vsel %vm412_vm3, %v351_v23, 0  ;;  %v493_v52 = vunpack.c.l.b16 %v351_v23 }
  0x23   : > { %423 = vmatpush.bf16.msra.mxu1 %v414_v25 }
  0x24   : > { %v494_v54 = vpack.c.b16 %v493_v52, %v493_v52 }
  0x26   : > { %872 = vmatmul.msk.bf16.vlgmr.msra.gmra.mxu0 %vm353_vm2, %v349_v4 }
  0x2a   : > { %596 = vrot.lane.b32.xlu2 %v436_v9, %s989_s19 }
  0x32   : > { %594 = vrot.lane.b32.xlu2 %v431_v14, %s989_s19 }
  0x7c   : > { %v519_v22 = vpop.permute.xlu2 %518 }
  0x7d   : > { %v524_v24 = vsel %vm353_vm2, %v519_v22, 0 }
  0x7e   : > { %533 = vmatpush.bf16.xpose.msrb.mxu1 %v524_v24 }
  0x84   : > { %v597_v26 = vpop.permute.xlu2 %596 }
  0x85   : > { %v602_v27 = vsel %vm353_vm2, %v597_v26, 0 }
  0x86   : > { %611 = vmatpush.bf16.xpose.msrb.mxu0 %v602_v27 }
  0x8c   : > { %v595_v28 = vpop.permute.xlu2 %594 }
  0x8d   : > { %878 = vmatmul.msk.bf16.vlgmr.msrb.gmra.mxu0 %vm353_vm2, %v595_v28 }
  0xa3   : > { %v369_v7 = vpop.f32.mrf.mxu0 }
  0xa4   : > { %v373_v8 = vmul.f32 0.35355338, %v369_v7 }
  0xa6   : > { %v377_v10 = vadd.f32 %v1079_v6, %v373_v8 }
  0xa8   : > { %v379_v11 = vsel %vm353_vm2, %v377_v10, -inf }
  0xa9   : > { %380 = vmax.xlane.f32.xlu0 %v379_v11 }
  0xab   : > { %v371_v12 = vpop.f32.mrf.mxu0 }
  0xac   : > { %v394_v12 = vld [vmem:[#allocation3] sm:$0xff] }
  0xbd   : > { %437 = vrot.lane.b32.xlu0 %v436_v9, %s990_s20 }
 0x10a   : > { %v613_v36 = vpop.f32.mrf.mxu0 }
 0x10b   : > { %v617_v37 = vmul.f32 0.35355338, %v613_v36 }
 0x10d   : > { %v1113_v38 = vadd.f32 %v1079_v6, %v617_v37 }
 0x10f   : > { %v621_v39 = vsel %vm353_vm2, %v1113_v38, -inf }
 0x110   : > { %622 = vmax.xlane.f32.xlu0 %v621_v39 }
 0x112   : > { %v615_v40 = vpop.f32.mrf.mxu0 }
 0x113   : > { %v478_v40 = vld [vmem:[#allocation3 + $0x8] sm:$0xff] }
 0x11c   : > { %v381_v17 = vpop.xlane.xlu0 %380 }
 0x11d   : > { %v1090_v18 = vmax.f32 %v1087_v16, %v381_v17 }
 0x11f   : > { %v383_v19 = vsub.f32 %v1087_v16, %v1090_v18  ;;  %402 = vst.msk [vmem:[#allocation2] sm:$0xff] %vm326_vm0, %v1090_v18  ;;  %388 = vperm.xlu1 %917, %v1090_v18  }
 0x121   : > { %v384_v1 = vmul.f32 1.442695, %v383_v19 }
 0x127   : > { %432 = vrot.lane.b32.xlu1 %v431_v14, %s990_s20 }
 0x12f   : > { %516 = vrot.lane.b32.xlu1 %v431_v14, %s988_s18  ;;  %v438_v20 = vpop.permute.xlu0 %437 }
 0x130   : > { %v443_v21 = vsel %vm353_vm2, %v438_v20, 0 }
 0x131   : > { %452 = vmatpush.bf16.xpose.msra.mxu2 %v443_v21 }
 0x183   : > { %v623_v57 = vpop.xlane.xlu0 %622 }
 0x184   : > { %v624_v58 = vmax.f32 %v1129_v56, %v623_v57 }
 0x186   : > { %v625_v59 = vsub.f32 %v1129_v56, %v624_v58  ;;  %644 = vst.msk [vmem:[#allocation2 + $0x18] sm:$0xff] %vm326_vm0, %v624_v58 }
 0x191   : > { %v389_v29 = vpop.permute.xlu1 %388 }
 0x192   : > { %v391_v30 = vsub.f32 %v377_v10, %v389_v29 }
 0x194   : > { %v392_v31 = vmul.f32 1.442695, %v391_v30 }
 0x196   : > { %921 = vpow2.f32 %v392_v31 }
 0x197   : > { %923 = vpow2.f32 %v384_v1 }
 0x199   : > { %v433_v32 = vpop.permute.xlu1 %432 }
 0x19a   : > { %874 = vmatmul.msk.bf16.vlgmr.msra.gmra.mxu2 %vm353_vm2, %v433_v32  ;;  %v626_v32 = vmul.f32 1.442695, %v625_v59 }
 0x19c   : > { %v922_v33 = vpop.eup %921 }
 0x19d   : > { %v408_v34 = vpack.c.bf16 %v922_v33, %v922_v33  ;;  %v396_v55 = vsel %vm353_vm2, %v922_v33, 0.0  ;;  %v924_v7 = vpop.eup %923 }
 0x19e   : > { %v395_v14 = vmul.f32 %v924_v7, %v394_v12 }
 0x19f   : > { %873 = vmatmul.msk.bf16.vlgmr.msra.gmra.mxu1 %vm353_vm2, %v408_v34 }
 0x1a1   : > { %v517_v35 = vpop.permute.xlu1 %516 }
 0x1af   : > { %876 = vmatmul.msk.bf16.vlgmr.msrb.gmra.mxu1 %vm353_vm2, %v517_v35 }
 0x21c   : > { %v1117_v41 = vpop.f32.mrf.mxu1 }
 0x21d   : > { %v454_v42 = vpop.f32.mrf.mxu2 }
 0x21e   : > { %v458_v43 = vmul.f32 0.35355338, %v454_v42 }
 0x220   : > { %v459_v44 = vadd.f32 %v1079_v6, %v458_v43 }
 0x222   : > { %v462_v45 = vsel %vm353_vm2, %v459_v44, -inf }
 0x223   : > { %463 = vmax.xlane.f32.xlu1 %v462_v45  ;;  %v637_v45 = vld [vmem:[#allocation3 + $0x18] sm:$0xff] }
 0x224   : > { %v427_v46 = vpop.f32.mrf.mxu1 }
 0x225   : > { %v456_v47 = vpop.f32.mrf.mxu2 }
 0x22c   : > { %v535_v48 = vpop.f32.mrf.mxu1 }
 0x22d   : > { %v539_v49 = vmul.f32 0.35355338, %v535_v48 }
 0x22f   : > { %v1122_v50 = vadd.f32 %v1079_v6, %v539_v49 }
 0x231   : > { %v543_v51 = vsel %vm353_vm2, %v1122_v50, -inf }
 0x232   : > { %544 = vmax.xlane.f32.xlu2 %v543_v51 }
 0x234   : > { %v537_v53 = vpop.f32.mrf.mxu1 }
 0x23c   : > { %495 = vrot.lane.b32.xlu1 %v494_v54, %s990_s20 }
 0x244   : > { %573 = vrot.lane.b32.xlu1 %v494_v54, %s988_s18 }
 0x26e   : > { %397 = vadd.xlane.f32.xlu1 %v396_v55  ;;  %v559_v55 = vld [vmem:[#allocation3 + $0x10] sm:$0xff] }
 0x296   : > { %v464_v61 = vpop.xlane.xlu1 %463 }
 0x297   : > { %v465_v62 = vmax.f32 %v461_v60, %v464_v61 }
 0x299   : > { %485 = vst.msk [vmem:[#allocation2 + $0x8] sm:$0xff] %vm326_vm0, %v465_v62  ;;  %471 = vperm.xlu2 %918, %v465_v62   ;;  %v466_v4 = vsub.f32 %v461_v60, %v465_v62 }
 0x29b   : > { %v467_v6 = vmul.f32 1.442695, %v466_v4 }
 0x2a1   : > { %630 = vperm.xlu2 %918, %v624_v58  }
 0x2a5   : > { %v545_v0 = vpop.xlane.xlu2 %544 }
 0x2a6   : > { %v546_v2 = vmax.f32 %v542_v63, %v545_v0 }
 0x2a8   : > { %v547_v3 = vsub.f32 %v542_v63, %v546_v2  ;;  %566 = vst.msk [vmem:[#allocation2 + $0x10] sm:$0xff] %vm326_vm0, %v546_v2  ;;  %552 = vperm.xlu0 %919, %v546_v2  }
 0x2a9   : > { %651 = vrot.lane.b32.xlu2 %v494_v54, %s989_s19 }
 0x2aa   : > { %v548_v5 = vmul.f32 1.442695, %v547_v3  ;;  %v677_v3 = vld [vmem:[#allocation4] sm:$0xff] }
 0x2ac   : > { %925 = vpow2.f32 %v548_v5 }
 0x2ad   : > { %927 = vpow2.f32 %v467_v6 }
 0x2ae   : > { %v496_v10 = vpop.permute.xlu1 %495 }
 0x2af   : > { %v501_v13 = vsel %vm412_vm3, %v496_v10, 0 }
 0x2b0   : > { %510 = vmatpush.bf16.msra.mxu3 %v501_v13 }
 0x2b1   : > { %405 = vperm.xlu2 %918, %v924_v7  }
 0x2b2   : > { %v1140_v8 = vpop.eup %925 }
 0x2b3   : > { %569 = vperm.xlu1 %917, %v1140_v8   ;;  %v928_v9 = vpop.eup %927  ;;  %v560_v56 = vmul.f32 %v1140_v8, %v559_v55 }
 0x2b4   : > { %v479_v42 = vmul.f32 %v928_v9, %v478_v40 }
 0x2b6   : > { %v574_v11 = vpop.permute.xlu1 %573 }
 0x2b7   : > { %v579_v19 = vsel %vm412_vm3, %v574_v11, 0 }
 0x2b8   : > { %588 = vmatpush.bf16.msrb.mxu3 %v579_v19 }
 0x2b9   : > { %488 = vperm.xlu2 %918, %v928_v9  }
 0x2e1   : > { %v398_v15 = vpop.xlane.xlu1 %397 }
 0x2e2   : > { %v399_v16 = vadd.f32 %v398_v15, %v395_v14 }
 0x2e4   : > { %401 = vst.msk [vmem:[#allocation3] sm:$0xff] %vm326_vm0, %v399_v16 }
 0x2f3   : > { %v472_v17 = vpop.permute.xlu2 %471 }
 0x2f4   : > { %v474_v18 = vsub.f32 %v459_v44, %v472_v17 }
 0x2f6   : > { %v475_v20 = vmul.f32 1.442695, %v474_v18 }
 0x2f8   : > { %929 = vpow2.f32 %v475_v20 }
 0x2fb   : > { %v631_v21 = vpop.permute.xlu2 %630 }
 0x2fc   : > { %v633_v22 = vsub.f32 %v1113_v38, %v631_v21 }
 0x2fe   : > { %v930_v23 = vpop.eup %929  ;;  %v634_v24 = vmul.f32 1.442695, %v633_v22 }
 0x2ff   : > { %v480_v25 = vsel %vm353_vm2, %v930_v23, 0.0  ;;  %v491_v26 = vpack.c.bf16 %v930_v23, %v930_v23 }
 0x300   : > { %931 = vpow2.f32 %v634_v24  ;;  %481 = vadd.xlane.f32.xlu0 %v480_v25 }
 0x301   : > { %875 = vmatmul.msk.bf16.vlgmr.msra.gmra.mxu3 %vm353_vm2, %v491_v26  ;;  %933 = vpow2.f32 %v626_v32 }
 0x303   : > { %v652_v27 = vpop.permute.xlu2 %651 }
 0x304   : > { %v657_v28 = vsel %vm412_vm3, %v652_v27, 0 }
 0x305   : > { %666 = vmatpush.bf16.msrb.mxu2 %v657_v28 }
 0x306   : > { %v932_v29 = vpop.eup %931 }
 0x307   : > { %v639_v30 = vsel %vm353_vm2, %v932_v29, 0.0  ;;  %v650_v31 = vpack.c.bf16 %v932_v29, %v932_v29  ;;  %v934_v34 = vpop.eup %933 }
 0x308   : > { %640 = vadd.xlane.f32.xlu0 %v639_v30  ;;  %v638_v46 = vmul.f32 %v934_v34, %v637_v45 }
 0x309   : > { %879 = vmatmul.msk.bf16.vlgmr.msrb.gmra.mxu2 %vm353_vm2, %v650_v31 }
 0x31a   : > { %v553_v33 = vpop.permute.xlu0 %552 }
 0x31b   : > { %v555_v35 = vsub.f32 %v1122_v50, %v553_v33  ;;  %v406_v50 = vpop.permute.xlu2 %405 }
 0x31c   : > { %647 = vperm.xlu0 %919, %v934_v34  }
 0x31d   : > { %v556_v36 = vmul.f32 1.442695, %v555_v35 }
 0x31f   : > { %935 = vpow2.f32 %v556_v36 }
 0x323   : > { %v489_v53 = vpop.permute.xlu2 %488 }
 0x324   : > { %v672_v0 = vsel %vm353_vm2, %v406_v50, %v489_v53 }
 0x325   : > { %v936_v37 = vpop.eup %935  ;;  %v570_v61 = vpop.permute.xlu1 %569 }
 0x326   : > { %v561_v38 = vsel %vm353_vm2, %v936_v37, 0.0  ;;  %v572_v39 = vpack.c.bf16 %v936_v37, %v936_v37  ;;  %v674_v1 = vsel %vm673_vm4, %v672_v0, %v570_v61 }
 0x327   : > { %562 = vadd.xlane.f32.xlu2 %v561_v38 }
 0x328   : > { %877 = vmatmul.msk.bf16.vlgmr.msrb.gmra.mxu3 %vm353_vm2, %v572_v39 }
 0x373   : > { %v482_v43 = vpop.xlane.xlu0 %481 }
 0x374   : > { %v483_v44 = vadd.f32 %v482_v43, %v479_v42 }
 0x376   : > { %484 = vst.msk [vmem:[#allocation3 + $0x8] sm:$0xff] %vm326_vm0, %v483_v44 }
 0x37b   : > { %v641_v47 = vpop.xlane.xlu0 %640 }
 0x37c   : > { %v642_v48 = vadd.f32 %v641_v47, %v638_v46 }
 0x37e   : > { %643 = vst.msk [vmem:[#allocation3 + $0x18] sm:$0xff] %vm326_vm0, %v642_v48 }
 0x384   : > { %v512_v49 = vpop.f32.mrf.mxu3 }
 0x385   : > { %680 = vrot.lane.b32.xlu2 %v512_v49, %s992_s25 }
 0x38c   : > { %v514_v51 = vpop.f32.mrf.mxu3  ;;  %v668_v52 = vpop.f32.mrf.mxu2 }
 0x38e   : > { %v648_v63 = vpop.permute.xlu0 %647 }
 0x38f   : > { %v676_v4 = vsel %vm675_vm5, %v674_v1, %v648_v63 }
 0x390   : > { %v678_v6 = vmul.f32 %v677_v3, %v676_v4 }
 0x394   : > { %v670_v54 = vpop.f32.mrf.mxu2 }
 0x39a   : > { %v563_v57 = vpop.xlane.xlu2 %562 }
 0x39b   : > { %v564_v58 = vadd.f32 %v563_v57, %v560_v56 }
 0x39d   : > { %565 = vst.msk [vmem:[#allocation3 + $0x10] sm:$0xff] %vm326_vm0, %v564_v58 }
 0x3ab   : > { %v590_v59 = vpop.f32.mrf.mxu3 }
 0x3ac   : > { %684 = vrot.lane.b32.xlu1 %v590_v59, %s993_s26 }
 0x3b3   : > { %v592_v60 = vpop.f32.mrf.mxu3 }
 0x3b4   : > { %688 = vrot.lane.b32.xlu1 %v668_v52, %s994_s28 }
 0x3df   : > { %v681_v2 = vpop.permute.xlu2 %680 }
 0x3e0   : > { %v691_v5 = vsel %vm353_vm2, %v1117_v41, %v681_v2 }
 0x41e   : > { %v685_v62 = vpop.permute.xlu1 %684 }
 0x41f   : > { %v692_v7 = vsel %vm673_vm4, %v691_v5, %v685_v62 }
 0x426   : > { %v689_v8 = vpop.permute.xlu1 %688 }
 0x427   : > { %v693_v9 = vsel %vm675_vm5, %v692_v7, %v689_v8 }
 0x428   : > { %v694_v10 = vadd.f32 %v693_v9, %v678_v6 }
 0x42a   : > { %696 = vst.msk [vmem:[#allocation4] sm:$0xff] %vm335_vm1, %v694_v10 }
 0x42b PF: > { %v995_v13 = vmov 0   ;;  %vm731_vm6 = vcmask 64512   ;;  %vm733_vm7 = vcmask 130048   ;;  %vm735_vm8 = vcmask 195584  }
 0x42c   : > { %v700_v12 = vld [vmem:[#allocation3] sm:$0xff]  ;;  %938 = vset.pattern.permute.xlu1 %v995_v13  ;;  %937 = vset.pattern.permute.xlu0 %v995_v13  ;;  %vm740_vm9 = vcmask 257024  }
 0x42d   : > { %v708_v15 = vld [vmem:[#allocation3 + $0x8] sm:$0xff] }
 0x42e   : > { %v716_v11 = vld [vmem:[#allocation3 + $0x10] sm:$0xff] }
 0x42f   : > { %939 = vrcp.f32 %v716_v11  ;;  %v724_v14 = vld [vmem:[#allocation3 + $0x18] sm:$0xff] }
 0x430   : > { %941 = vrcp.f32 %v700_v12 }
 0x431   : > { %943 = vrcp.f32 %v724_v14  ;;  %v737_v22 = vld [vmem:[#allocation4] sm:$0xff] }
 0x432   : > { %945 = vrcp.f32 %v708_v15 }
 0x435   : > { %v940_v16 = vpop.eup %939 }
 0x436   : > { %v942_v41 = vpop.eup %941  ;;  %720 = vperm.xlu1 %938, %v940_v16  }
 0x437   : > { %704 = vperm.xlu0 %937, %v942_v41   ;;  %v944_v17 = vpop.eup %943 }
 0x438   : > { %v946_v18 = vpop.eup %945 }
 0x43e   : > { %728 = vperm.xlu1 %938, %v944_v17  }
 0x43f   : > { %712 = vperm.xlu0 %937, %v946_v18  }
 0x4a8   : > { %v721_v19 = vpop.permute.xlu1 %720 }
 0x4a9   : > { %v705_v20 = vpop.permute.xlu0 %704 }
 0x4b0   : > { %v729_v24 = vpop.permute.xlu1 %728 }
 0x4b1   : > { %v713_v21 = vpop.permute.xlu0 %712 }
 0x4b2   : > { %v732_v23 = vsel %vm731_vm6, %v705_v20, %v713_v21 }
 0x4b3   : > { %v734_v25 = vsel %vm733_vm7, %v732_v23, %v721_v19 }
 0x4b4   : > { %v736_v26 = vsel %vm735_vm8, %v734_v25, %v729_v24 }
 0x4b5   : > { %v738_v27 = vmul.f32 %v737_v22, %v736_v26 }
 0x4b7   : > { %v739_v28 = vpack.c.bf16 %v738_v27, %v738_v27 }
 0x4b9   : > { %741 = vst.msk [vmem:[%s320_s17] sm:$0xf] %vm740_vm9, %v739_v28 }
 0x4ba PF: > { %s23_s24 = sadd.s32 1, %s983_s24   ;;  %s1183_s22 = smov %s979_s23 }
 0x4bb   : > { %p20_p6 = scmp.ge.s32.totalorder %s23_s24, 4   ;;  %s1184_s23 = smov %s1186_s0 }
 0x4bd   :  { %22 = sbr.rel (!%p20_p6) target bundleno = 8 (0x8), region = 96 }

// kernel: model_forward.22
= control target key start
LH: loop header
LB: loop body
LE: loop exit
PB: predicated region body
PF: predicated region fallthrough
CT: control target
= control target key end

     0   :  { %vm67_vm0 = vcmask 523264   ;;  %vm91_vm1 = vcmask 261120   ;;  %v204_v17 = vmov 32.0   ;;  %vm157_vm7 = vcmask 257024   ;;  %s277_s1 = inlined_call_operand.vmem [shape: bf16[64,32], index: 1, kind: input, shape index: {}]   ;;  %s278_s2 = inlined_call_operand.vmem [shape: f32[1,32], index: 2, kind: input, shape index: {}]   ;;  %s279_s0 = inlined_call_operand.vmem [shape: bf16[16,64], index: 0, kind: input, shape index: {}]   ;;  %s280_s3 = inlined_call_operand.vmem [shape: bf16[16,32], index: 3, kind: input, shape index: {}]   ;;  %s281_s4 = inlined_call_operand.vmem [shape: f32[1,32], index: 4, kind: input, shape index: {}]   ;;  %s282_s5 = inlined_call_operand.vmem [shape: f32[1,32], index: 5, kind: input, shape index: {}]   ;;  %s283_s6 = inlined_call_operand.vmem [shape: bf16[16,32], index: 6, kind: output, shape index: {}]  }
   0x1   :  { %v189_v0 = vld [vmem:[%s277_s1 + $0x18] sm:$0xff]  ;;  %v188_v1 = vld [vmem:[%s277_s1 + $0x10] sm:$0xff]  ;;  %v187_v2 = vld [vmem:[%s277_s1 + $0x8] sm:$0xff]  ;;  %198 = vrcp.f32 %v204_v17 }
   0x2   :  { %75 = vmatpush.bf16.msra.mxu0 %v189_v0  ;;  %v186_v3 = vld [vmem:[%s277_s1] sm:$0xff] }
   0x3   :  { %v185_v4 = vld [vmem:[%s279_s0] sm:$0xff] }
   0x4   :  { %v191_v5 = vld [vmem:[%s280_s3] sm:$0xff]  }
   0x5   :  { %v195_v6 = vld [vmem:[%s278_s2] ss:$0 sm:$0xff]  ;;  %v192_v7 = vunpack.c.l.bf16 %v191_v5  ;;  %v193_v12 = vunpack.c.h.bf16 %v191_v5 }
   0x6   :  { %76 = vmatpush.bf16.msra.mxu0 %v188_v1  ;;  %v196_v48 = vld [vmem:[%s281_s4] ss:$0 sm:$0xff] }
   0x7   :  { %v199_v18 = vpop.eup %198  ;;  %v197_v51 = vld [vmem:[%s282_s5] ss:$0 sm:$0xff] }
   0x8   :  { %v99_v19 = vmul.f32 32.0, %v199_v18  ;;  %vm103_vm2 = vweird.f32 %v199_v18 }
   0xa   :  { %77 = vmatpush.bf16.msra.mxu0 %v187_v2  ;;  %v100_v20 = vsub.f32 1.0, %v99_v19 }
   0xc   :  { %v101_v21 = vmul.f32 %v199_v18, %v100_v20 }
   0xe   :  { %78 = vmatpush.bf16.msra.mxu0 %v186_v3  ;;  %v102_v22 = vadd.f32 %v199_v18, %v101_v21 }
  0x10   :  { %v104_v23 = vsel %vm103_vm2, %v199_v18, %v102_v22 }
  0x11   :  { %184 = vmatmul.msk.bf16.vlgmr.msra.gmra.mxu0 %vm67_vm0, %v185_v4 }
  0x8e   :  { %v80_v8 = vpop.f32.mrf.mxu0 }
  0x8f   :  { %v81_v9 = vadd.f32 %v195_v6, %v80_v8 }
  0x91   :  { %v89_v10 = vadd.f32 %v192_v7, %v81_v9 }
  0x93   :  { %v92_v11 = vsel %vm91_vm1, %v89_v10, 0.0 }
  0x94   :  { %93 = vadd.xlane.f32.xlu0 %v92_v11 }
  0x96   :  { %v82_v13 = vpop.f32.mrf.mxu0 }
  0x97   :  { %v83_v14 = vadd.f32 %v195_v6, %v82_v13 }
  0x99   :  { %v90_v15 = vadd.f32 %v193_v12, %v83_v14 }
  0x9b   :  { %v95_v16 = vsel %vm91_vm1, %v90_v15, 0.0 }
  0x9c   :  { %96 = vadd.xlane.f32.xlu0 %v95_v16 }
 0x107   :  { %v94_v24 = vpop.xlane.xlu0 %93 }
 0x108   :  { %v105_v25 = vmul.f32 %v104_v23, %v94_v24 }
 0x10a   :  { %v107_v26 = vsub.f32 %v89_v10, %v105_v25 }
 0x10c   :  { %v109_v27 = vmul.f32 %v107_v26, %v107_v26 }
 0x10e   :  { %v111_v28 = vsel %vm91_vm1, %v109_v27, 0.0 }
 0x10f   :  { %112 = vadd.xlane.f32.xlu1 %v111_v28  ;;  %v97_v29 = vpop.xlane.xlu0 %96 }
 0x110   :  { %v106_v30 = vmul.f32 %v104_v23, %v97_v29 }
 0x112   :  { %v108_v31 = vsub.f32 %v90_v15, %v106_v30 }
 0x114   :  { %v110_v32 = vmul.f32 %v108_v31, %v108_v31 }
 0x116   :  { %v114_v33 = vsel %vm91_vm1, %v110_v32, 0.0 }
 0x117   :  { %115 = vadd.xlane.f32.xlu1 %v114_v33 }
 0x182   :  { %v113_v34 = vpop.xlane.xlu1 %112 }
 0x183   :  { %v117_v35 = vmul.f32 %v113_v34, %v104_v23 }
 0x185   :  { %v119_v36 = vadd.f32 1e-12, %v117_v35 }
 0x187   :  { %200 = vrsqrt.f32 %v119_v36  ;;  %vm127_vm4 = vweird.f32 %v119_v36 }
 0x18a   :  { %v116_v37 = vpop.xlane.xlu1 %115 }
 0x18b   :  { %v118_v38 = vmul.f32 %v116_v37, %v104_v23 }
 0x18d   :  { %v201_v39 = vpop.eup %200  ;;  %v120_v40 = vadd.f32 1e-12, %v118_v38 }
 0x18e   :  { %v122_v41 = vmul.f32 %v201_v39, %v119_v36  ;;  %vm128_vm3 = vweird.f32 %v201_v39 }
 0x18f   :  { %202 = vrsqrt.f32 %v120_v40  ;;  %vm129_vm5 = vmor %vm127_vm4, %vm128_vm3  ;;  %vm137_vm8 = vweird.f32 %v120_v40 }
 0x190   :  { %v123_v42 = vmul.f32 %v201_v39, %v122_v41 }
 0x192   :  { %v124_v43 = vmul.f32 0.5, %v123_v42 }
 0x194   :  { %v125_v44 = vsub.f32 1.5, %v124_v43 }
 0x195   :  { %v203_v45 = vpop.eup %202 }
 0x196   :  { %v126_v46 = vmul.f32 %v201_v39, %v125_v44  ;;  %v132_v47 = vmul.f32 %v203_v45, %v120_v40  ;;  %vm138_vm6 = vweird.f32 %v203_v45 }
 0x197   :  { %vm139_vm9 = vmor %vm137_vm8, %vm138_vm6 }
 0x198   :  { %v130_v49 = vsel %vm129_vm5, %v201_v39, %v126_v46  ;;  %v133_v50 = vmul.f32 %v203_v45, %v132_v47 }
 0x199   :  { %v141_v52 = vmul.f32 %v130_v49, %v107_v26 }
 0x19a   :  { %v134_v53 = vmul.f32 0.5, %v133_v50 }
 0x19b   :  { %v147_v54 = vmul.f32 %v196_v48, %v141_v52 }
 0x19c   :  { %v135_v55 = vsub.f32 1.5, %v134_v53 }
 0x19d   :  { %v153_v56 = vadd.f32 %v197_v51, %v147_v54 }
 0x19e   :  { %v136_v57 = vmul.f32 %v203_v45, %v135_v55 }
 0x19f   :  { %v155_v58 = vpack.c.bf16 %v153_v56, %v153_v56 }
 0x1a0   :  { %v140_v59 = vsel %vm139_vm9, %v203_v45, %v136_v57 }
 0x1a1   :  { %158 = vst.msk [vmem:[%s283_s6] sm:$0xf] %vm157_vm7, %v155_v58  ;;  %v142_v60 = vmul.f32 %v140_v59, %v108_v31 }
 0x1a3   :  { %v148_v61 = vmul.f32 %v196_v48, %v142_v60 }
 0x1a5   :  { %v154_v62 = vadd.f32 %v197_v51, %v148_v61 }
 0x1a7   :  { %v156_v63 = vpack.c.bf16 %v154_v62, %v154_v62 }
 0x1a9   :  { %159 = vst.msk [vmem:[%s283_s6 + $0x4] sm:$0xf] %vm157_vm7, %v156_v63 }

// kernel: model_forward.21
= control target key start
LH: loop header
LB: loop body
LE: loop exit
PB: predicated region body
PF: predicated region fallthrough
CT: control target
= control target key end

     0   :  { %vm42_vm0 = vcmask 261120   ;;  %v147_v43 = vmov -1.0   ;;  %vm114_vm3 = vcmask 519168   ;;  %s186_s1 = inlined_call_operand.vmem [shape: bf16[32,64], index: 1, kind: input, shape index: {}]   ;;  %s187_s2 = inlined_call_operand.vmem [shape: f32[1,64], index: 2, kind: input, shape index: {}]   ;;  %s188_s0 = inlined_call_operand.vmem [shape: bf16[16,32], index: 0, kind: input, shape index: {}]   ;;  %s189_s3 = inlined_call_operand.vmem [shape: bf16[16,64], index: 3, kind: output, shape index: {}]  }
   0x1   :  { %v136_v0 = vld [vmem:[%s186_s1 + $0x8] sm:$0xff]  ;;  %v135_v1 = vld [vmem:[%s186_s1] sm:$0xff] }
   0x2   :  { %52 = vmatpush.bf16.msra.mxu0 %v136_v0  ;;  %v134_v2 = vld [vmem:[%s188_s0] sm:$0xff] }
   0x3   :  { %v138_v3 = vld [vmem:[%s187_s2] ss:$0 sm:$0xff] }
   0x6   :  { %53 = vmatpush.bf16.msra.mxu0 %v135_v1 }
   0x9   :  { %133 = vmatmul.msk.bf16.vlgmr.msra.gmra.mxu0 %vm42_vm0, %v134_v2 }
  0x86   :  { %v55_v4 = vpop.f32.mrf.mxu0 }
  0x87   :  { %v56_v5 = vadd.f32 %v138_v3, %v55_v4 }
  0x89   :  { %v62_v6 = vmul.f32 0.70710677, %v56_v5  ;;  %v60_v47 = vmul.f32 0.5, %v56_v5 }
  0x8b   :  { %v68_v7 = vand.u32 2147483647, %v62_v6  ;;  %vm64_vm1 = vcmp.ge.f32.partialorder %v62_v6, 0.0 }
  0x8c   :  { %v66_v44 = vsel %vm64_vm1, 1.0, %v147_v43 }
  0x8d   :  { %v70_v8 = vmul.f32 0.3275911, %v68_v7  ;;  %v94_v16 = vsub.f32 0.0, %v68_v7 }
  0x8e   :  { %v57_v9 = vpop.f32.mrf.mxu0 }
  0x8f   :  { %v72_v10 = vadd.f32 1.0, %v70_v8  ;;  %v58_v11 = vadd.f32 %v138_v3, %v57_v9  ;;  %v96_v20 = vmul.f32 %v94_v16, %v68_v7 }
  0x91   :  { %139 = vrcp.f32 %v72_v10  ;;  %v63_v12 = vmul.f32 0.70710677, %v58_v11  ;;  %v98_v24 = vmul.f32 1.442695, %v96_v20  ;;  %v61_v57 = vmul.f32 0.5, %v58_v11 }
  0x93   :  { %v69_v13 = vand.u32 2147483647, %v63_v12  ;;  %vm65_vm2 = vcmp.ge.f32.partialorder %v63_v12, 0.0 }
  0x94   :  { %v67_v55 = vsel %vm65_vm2, 1.0, %v147_v43 }
  0x95   :  { %v71_v14 = vmul.f32 0.3275911, %v69_v13  ;;  %v95_v25 = vsub.f32 0.0, %v69_v13 }
  0x97   :  { %v140_v15 = vpop.eup %139  ;;  %v73_v17 = vadd.f32 1.0, %v71_v14  ;;  %v97_v30 = vmul.f32 %v95_v25, %v69_v13 }
  0x98   :  { %v76_v18 = vmul.f32 1.0614054, %v140_v15 }
  0x99   :  { %141 = vrcp.f32 %v73_v17  ;;  %v100_v35 = vmul.f32 1.442695, %v97_v30 }
  0x9a   :  { %v78_v19 = vadd.f32 -1.4531521, %v76_v18  ;;  %143 = vpow2.f32 %v98_v24 }
  0x9b   :  { %145 = vpow2.f32 %v100_v35 }
  0x9c   :  { %v80_v21 = vmul.f32 %v140_v15, %v78_v19 }
  0x9e   :  { %v82_v22 = vadd.f32 1.4214138, %v80_v21 }
  0x9f   :  { %v142_v23 = vpop.eup %141 }
  0xa0   :  { %v84_v26 = vmul.f32 %v140_v15, %v82_v22  ;;  %v77_v27 = vmul.f32 1.0614054, %v142_v23  ;;  %v144_v38 = vpop.eup %143 }
  0xa1   :  { %v146_v50 = vpop.eup %145 }
  0xa2   :  { %v86_v28 = vadd.f32 -0.28449672, %v84_v26  ;;  %v79_v29 = vadd.f32 -1.4531521, %v77_v27 }
  0xa4   :  { %v88_v31 = vmul.f32 %v140_v15, %v86_v28  ;;  %v81_v32 = vmul.f32 %v142_v23, %v79_v29 }
  0xa6   :  { %v90_v33 = vadd.f32 0.2548296, %v88_v31  ;;  %v83_v34 = vadd.f32 1.4214138, %v81_v32 }
  0xa8   :  { %v92_v36 = vmul.f32 %v140_v15, %v90_v33  ;;  %v85_v37 = vmul.f32 %v142_v23, %v83_v34 }
  0xaa   :  { %v102_v39 = vmul.f32 %v144_v38, %v92_v36  ;;  %v87_v40 = vadd.f32 -0.28449672, %v85_v37 }
  0xac   :  { %v104_v41 = vsub.f32 1.0, %v102_v39  ;;  %v89_v42 = vmul.f32 %v142_v23, %v87_v40 }
  0xae   :  { %v106_v45 = vmul.f32 %v104_v41, %v66_v44  ;;  %v91_v46 = vadd.f32 0.2548296, %v89_v42 }
  0xb0   :  { %v108_v48 = vadd.f32 1.0, %v106_v45  ;;  %v93_v49 = vmul.f32 %v142_v23, %v91_v46 }
  0xb2   :  { %v110_v51 = vmul.f32 %v108_v48, %v60_v47  ;;  %v103_v52 = vmul.f32 %v146_v50, %v93_v49 }
  0xb4   :  { %v112_v53 = vpack.c.bf16 %v110_v51, %v110_v51  ;;  %v105_v54 = vsub.f32 1.0, %v103_v52 }
  0xb6   :  { %115 = vst.msk [vmem:[%s189_s3] sm:$0xf] %vm114_vm3, %v112_v53  ;;  %v107_v56 = vmul.f32 %v105_v54, %v67_v55 }
  0xb8   :  { %v109_v58 = vadd.f32 1.0, %v107_v56 }
  0xba   :  { %v111_v59 = vmul.f32 %v109_v58, %v61_v57 }
  0xbc   :  { %v113_v60 = vpack.c.bf16 %v111_v59, %v111_v59 }
  0xbe   :  { %116 = vst.msk [vmem:[%s189_s3 + $0x4] sm:$0xf] %vm114_vm3, %v113_v60 }

</bundles_post_ra>
